<compile_context>
chip_gen: v6e
topology: v6e:2x2x1
jax: 0.10.0
libtpu: 0.0.40
codegen_flags: <defaults>
</compile_context>

<pallas_src>
import functools
import math

import jax
import jax.numpy as jnp
from jax import lax
from jax.experimental import pallas as pl
from jax.experimental.pallas import tpu as pltpu


def _csafr_kernel(feat_ref, w_ref, b_ref, mfeat_ref, logits_ref, *, n_cls):
    # feat_ref  : (TB, C, HW)        native dtype (NCHW, spatial flattened)
    # w_ref     : (n_cls_pad, C)     f32, rows >= n_cls are zero
    # b_ref     : (1, n_cls_pad)     f32, lanes >= n_cls are zero
    # mfeat_ref : (TB, C, HW)        native dtype
    # logits_ref: (TB, 1, n_cls_pad) f32
    tb, c, hw = feat_ref.shape
    n_cls_pad = w_ref.shape[0]

    # Global average pool over the spatial (lane) axis with f32 accumulation.
    # The f32 cast feeds only the reduce, so no long-lived f32 copy of the tile.
    g = jnp.sum(feat_ref[...].astype(jnp.float32), axis=-1) * (1.0 / hw)   # (TB, C)

    w = w_ref[...]                                                         # (ncp, C)
    b = b_ref[...]                                                         # (1, ncp)

    # Probe linear layer: logits = g @ W.T + b  (contract over C on the MXU).
    logits = lax.dot_general(g, w, (((1,), (1,)), ((), ())),
                             preferred_element_type=jnp.float32) + b       # (TB, ncp)
    logits_ref[:, 0, :] = logits

    # First-occurrence argmax over the *real* classes (matches torch .max(1)[1]).
    iota = lax.broadcasted_iota(jnp.int32, (tb, n_cls_pad), 1)
    logits_v = jnp.where(iota < n_cls, logits, jnp.float32(-1e30))
    mx = jnp.max(logits_v, axis=-1, keepdims=True)
    big = jnp.int32(2 ** 31 - 1)
    pred = jnp.min(jnp.where(logits_v == mx, iota, big),
                   axis=-1, keepdims=True)                                 # (TB, 1)

    # Closed-form gradient of sum_n logits[n, pred_n] wrt per-channel scores:
    #   grad = g * W[pred]     (row gather via one-hot @ W on the MXU).
    onehot = (iota == pred).astype(jnp.float32)                            # (TB, ncp)
    w_sel = lax.dot_general(onehot, w, (((1,), (0,)), ((), ())),
                            preferred_element_type=jnp.float32)            # (TB, C)
    grad = g * w_sel

    # mask = softmax(1 + grad / ||grad|| * sqrt(C)/2) over channels.
    norm = jnp.sqrt(jnp.sum(grad * grad, axis=-1, keepdims=True))
    mask_pre = 1.0 + grad / norm * (math.sqrt(c) / 2.0)
    mask_pre = mask_pre - jnp.max(mask_pre, axis=-1, keepdims=True)
    e = jnp.exp(mask_pre)
    mask = e / jnp.sum(e, axis=-1, keepdims=True)                          # (TB, C)

    # masked_feat = feat * mask, broadcast over the spatial lanes; multiply in
    # feat's native dtype (no second full-tile f32 temporary).
    mask_b = mask.astype(mfeat_ref.dtype)[:, :, None]                      # (TB, C, 1)
    mfeat_ref[...] = feat_ref[...] * mask_b


def csafr_forward(feat_nchw, weight, bias, *, block_bytes=4 * 1024 * 1024):
    """feat_nchw: (N, C, H, W); weight: (n_cls, C); bias: (n_cls,)."""
    N, C, H, W = feat_nchw.shape
    HW = H * W
    n_cls = weight.shape[0]
    n_cls_pad = pl.cdiv(n_cls, 128) * 128

    # Free layout change: NCHW -> (N, C, HW). No transpose; C stays on the
    # sublane axis and HW lands on the lane axis.
    feat3 = feat_nchw.reshape(N, C, HW)

    # Batch TB samples per grid step; keep each feat block around block_bytes
    # so (input + output) double buffers stay well under the 32 MiB scoped
    # VMEM default (and v7x's 64 MiB physical VMEM).
    per_sample = int(C * HW * feat_nchw.dtype.itemsize)
    tb = int(max(1, min(N, block_bytes // max(per_sample, 1))))
    grid_n = pl.cdiv(N, tb)
    n_pad = grid_n * tb
    if n_pad != N:
        # Zero-padded rows produce garbage (0/0 norm) but are sliced off below
        # and never contaminate real rows.
        feat3 = jnp.pad(feat3, ((0, n_pad - N), (0, 0), (0, 0)))

    # Pad the class dim to a multiple of 128 -> lane-dense logits stores.
    w_pad = jnp.pad(weight.astype(jnp.float32), ((0, n_cls_pad - n_cls), (0, 0)))
    b_pad = jnp.pad(bias.astype(jnp.float32), (0, n_cls_pad - n_cls)).reshape(1, n_cls_pad)

    kernel = functools.partial(_csafr_kernel, n_cls=n_cls)

    masked3, logits3 = pl.pallas_call(
        kernel,
        out_shape=(
            jax.ShapeDtypeStruct((n_pad, C, HW), feat_nchw.dtype),
            jax.ShapeDtypeStruct((n_pad, 1, n_cls_pad), jnp.float32),
        ),
        grid_spec=pltpu.PrefetchScalarGridSpec(
            num_scalar_prefetch=0,
            grid=(grid_n,),
            in_specs=[
                pl.BlockSpec((tb, C, HW), lambda n: (n, 0, 0)),
                pl.BlockSpec((n_cls_pad, C), lambda n: (0, 0)),
                pl.BlockSpec((1, n_cls_pad), lambda n: (0, 0)),
            ],
            out_specs=[
                pl.BlockSpec((tb, C, HW), lambda n: (n, 0, 0)),
                pl.BlockSpec((tb, 1, n_cls_pad), lambda n: (n, 0, 0)),
            ],
        ),
        compiler_params=pltpu.CompilerParams(
            dimension_semantics=("parallel",)),
    )(feat3, w_pad, b_pad)

    masked_nchw = masked3[:N].reshape(N, C, H, W)
    pred_cas = logits3[:N, 0, :n_cls]
    return masked_nchw, pred_cas


def csafr_reference(feat_nchw, weight, bias):
    """Pure-JAX reference of the PyTorch forward (eval mode, y=None)."""
    N, C, H, W = feat_nchw.shape
    g = jnp.mean(feat_nchw.astype(jnp.float32), axis=(2, 3))      # (N, C)
    logits = g @ weight.T + bias                                  # (N, n_cls)
    pred = jnp.argmax(logits, axis=1)                             # (N,)
    grad = g * weight[pred]                                       # (N, C)
    norm = jnp.linalg.norm(grad, axis=1, keepdims=True)
    mask_pre = 1.0 + grad / norm * (math.sqrt(C) / 2.0)
    mask = jax.nn.softmax(mask_pre, axis=1)
    masked = feat_nchw * mask[:, :, None, None]
    return masked, logits


if __name__ == "__main__":
    # Small shapes consistent with the module: CSAFR(n_feat=128, n_cls=10).
    N, C, H, W = 2, 128, 4, 4
    n_cls = 10

    key = jax.random.PRNGKey(0)
    k_feat, k_w, k_b = jax.random.split(key, 3)

    feat = jax.random.normal(k_feat, (N, C, H, W), dtype=jnp.float32)
    # Deterministic Linear params (nn.Linear(n_feat, n_cls) shapes).
    bound = 1.0 / math.sqrt(C)
    weight = jax.random.uniform(k_w, (n_cls, C), minval=-bound, maxval=bound,
                                dtype=jnp.float32)
    bias = jax.random.uniform(k_b, (n_cls,), minval=-bound, maxval=bound,
                              dtype=jnp.float32)

    masked_feat, pred_cas = csafr_forward(feat, weight, bias)
    jax.block_until_ready((masked_feat, pred_cas))

    ref_masked, ref_logits = csafr_reference(feat, weight, bias)
    assert masked_feat.shape == (N, C, H, W)
    assert pred_cas.shape == (N, n_cls)
    assert jnp.allclose(pred_cas, ref_logits, atol=1e-5, rtol=1e-5)
    assert jnp.allclose(masked_feat, ref_masked, atol=1e-5, rtol=1e-5)

    print("KERNEL_OK")
</pallas_src>

<mosaic_0001>
module attributes {stable_mosaic.version = 11 : i64} {
  func.func @_csafr_kernel(%arg0: i32, %arg1: memref<2x128x16xf32, #tpu.memory_space<vmem>>, %arg2: memref<128x128xf32, #tpu.memory_space<vmem>>, %arg3: memref<1x128xf32, #tpu.memory_space<vmem>>, %arg4: memref<2x128x16xf32, #tpu.memory_space<vmem>>, %arg5: memref<2x1x128xf32, #tpu.memory_space<vmem>>) attributes {dimension_semantics = [#tpu.dimension_semantics<parallel>], iteration_bounds = array<i64: 1>, scalar_prefetch = 0 : i64, scratch_operands = 0 : i64, tpu.core_type = #tpu.core_type<tc>, window_params = [{transform_indices = @transform_0, window_bounds = array<i64: 2, 128, 16>}, {pipeline_mode = #tpu.pipeline_mode<synchronous>, transform_indices = @transform_1, window_bounds = array<i64: 128, 128>}, {pipeline_mode = #tpu.pipeline_mode<synchronous>, transform_indices = @transform_2, window_bounds = array<i64: 1, 128>}, {transform_indices = @transform_3, window_bounds = array<i64: 2, 128, 16>}, {transform_indices = @transform_4, window_bounds = array<i64: 2, 1, 128>}]} {
    %c0 = arith.constant 0 : index
    %c0_0 = arith.constant 0 : index
    %c0_1 = arith.constant 0 : index
    %0 = vector.load %arg1[%c0, %c0_0, %c0_1] : memref<2x128x16xf32, #tpu.memory_space<vmem>>, vector<2x128x16xf32>
    %cst = arith.constant dense<0.000000e+00> : vector<2x128xf32>
    %1 = vector.multi_reduction <add>, %0, %cst [2] : vector<2x128x16xf32> to vector<2x128xf32>
    %cst_2 = arith.constant 6.250000e-02 : f32
    %2 = vector.broadcast %cst_2 : f32 to vector<2x128xf32>
    %3 = arith.mulf %1, %2 : vector<2x128xf32>
    %c0_3 = arith.constant 0 : index
    %c0_4 = arith.constant 0 : index
    %4 = vector.load %arg2[%c0_3, %c0_4] : memref<128x128xf32, #tpu.memory_space<vmem>>, vector<128x128xf32>
    %c0_5 = arith.constant 0 : index
    %c0_6 = arith.constant 0 : index
    %5 = vector.load %arg3[%c0_5, %c0_6] : memref<1x128xf32, #tpu.memory_space<vmem>>, vector<1x128xf32>
    %cst_7 = arith.constant dense<0.000000e+00> : vector<2x128xf32>
    %6 = tpu.matmul %3, %4, %cst_7 {dimension_numbers = #tpu.dot_dimension_numbers<[1], [1], [0], [0], [0, 0, 1, 0], [], []>} : vector<2x128xf32>, vector<128x128xf32>, vector<2x128xf32> -> vector<2x128xf32>
    %7 = vector.broadcast %5 : vector<1x128xf32> to vector<2x128xf32>
    %8 = arith.addf %6, %7 : vector<2x128xf32>
    %c0_8 = arith.constant 0 : index
    %c0_9 = arith.constant 0 : index
    %c0_10 = arith.constant 0 : index
    %9 = vector.load %arg5[%c0_8, %c0_9, %c0_10] : memref<2x1x128xf32, #tpu.memory_space<vmem>>, vector<2x1x128xf32>
    %10 = vector.shape_cast %9 : vector<2x1x128xf32> to vector<2x128xf32>
    %11 = vector.shape_cast %8 : vector<2x128xf32> to vector<2x1x128xf32>
    tpu.vector_store %arg5[%c0_8, %c0_9, %c0_10], %11 {strides = array<i32>} : memref<2x1x128xf32, #tpu.memory_space<vmem>>, vector<2x1x128xf32>,
    %12 = tpu.iota {dimensions = array<i32: 1>} : vector<2x128xi32>
    %c10_i32 = arith.constant 10 : i32
    %13 = vector.broadcast %c10_i32 : i32 to vector<2x128xi32>
    %14 = arith.cmpi slt, %12, %13 : vector<2x128xi32>
    %cst_11 = arith.constant -1.000000e+30 : f32
    %15 = vector.broadcast %cst_11 : f32 to vector<2x128xf32>
    %16 = arith.select %14, %8, %15 : vector<2x128xi1>, vector<2x128xf32>
    %cst_12 = arith.constant dense<0xFF800000> : vector<2xf32>
    %17 = vector.multi_reduction <maximumf>, %16, %cst_12 [1] : vector<2x128xf32> to vector<2xf32>
    %18 = vector.shape_cast %17 : vector<2xf32> to vector<2x1xf32>
    %19 = vector.broadcast %18 : vector<2x1xf32> to vector<2x128xf32>
    %20 = arith.cmpf oeq, %16, %19 : vector<2x128xf32>
    %c2147483647_i32 = arith.constant 2147483647 : i32
    %21 = vector.broadcast %c2147483647_i32 : i32 to vector<2x128xi32>
    %22 = arith.select %20, %12, %21 : vector<2x128xi1>, vector<2x128xi32>
    %cst_13 = arith.constant dense<2147483647> : vector<2xi32>
    %23 = vector.multi_reduction <minsi>, %22, %cst_13 [1] : vector<2x128xi32> to vector<2xi32>
    %24 = vector.shape_cast %23 : vector<2xi32> to vector<2x1xi32>
    %25 = vector.broadcast %24 : vector<2x1xi32> to vector<2x128xi32>
    %26 = arith.cmpi eq, %12, %25 : vector<2x128xi32>
    %27 = arith.extui %26 : vector<2x128xi1> to vector<2x128xi32>
    %28 = arith.sitofp %27 : vector<2x128xi32> to vector<2x128xf32>
    %cst_14 = arith.constant dense<0.000000e+00> : vector<2x128xf32>
    %29 = tpu.matmul %28, %4, %cst_14 {dimension_numbers = #tpu.dot_dimension_numbers<[1], [0], [0], [1], [0, 0, 1, 1], [], []>} : vector<2x128xf32>, vector<128x128xf32>, vector<2x128xf32> -> vector<2x128xf32>
    %30 = arith.mulf %3, %29 : vector<2x128xf32>
    %31 = arith.mulf %30, %30 : vector<2x128xf32>
    %cst_15 = arith.constant dense<0.000000e+00> : vector<2xf32>
    %32 = vector.multi_reduction <add>, %31, %cst_15 [1] : vector<2x128xf32> to vector<2xf32>
    %33 = vector.shape_cast %32 : vector<2xf32> to vector<2x1xf32>
    %34 = math.sqrt %33 : vector<2x1xf32>
    %35 = vector.broadcast %34 : vector<2x1xf32> to vector<2x128xf32>
    %36 = arith.divf %30, %35 : vector<2x128xf32>
    %cst_16 = arith.constant 5.65685415 : f32
    %37 = vector.broadcast %cst_16 : f32 to vector<2x128xf32>
    %38 = arith.mulf %36, %37 : vector<2x128xf32>
    %cst_17 = arith.constant 1.000000e+00 : f32
    %39 = vector.broadcast %cst_17 : f32 to vector<2x128xf32>
    %40 = arith.addf %39, %38 : vector<2x128xf32>
    %cst_18 = arith.constant dense<0xFF800000> : vector<2xf32>
    %41 = vector.multi_reduction <maximumf>, %40, %cst_18 [1] : vector<2x128xf32> to vector<2xf32>
    %42 = vector.shape_cast %41 : vector<2xf32> to vector<2x1xf32>
    %43 = vector.broadcast %42 : vector<2x1xf32> to vector<2x128xf32>
    %44 = arith.subf %40, %43 : vector<2x128xf32>
    %45 = math.exp %44 : vector<2x128xf32>
    %cst_19 = arith.constant dense<0.000000e+00> : vector<2xf32>
    %46 = vector.multi_reduction <add>, %45, %cst_19 [1] : vector<2x128xf32> to vector<2xf32>
    %47 = vector.shape_cast %46 : vector<2xf32> to vector<2x1xf32>
    %48 = vector.broadcast %47 : vector<2x1xf32> to vector<2x128xf32>
    %49 = arith.divf %45, %48 : vector<2x128xf32>
    %50 = vector.shape_cast %49 : vector<2x128xf32> to vector<2x128x1xf32>
    %c0_20 = arith.constant 0 : index
    %c0_21 = arith.constant 0 : index
    %c0_22 = arith.constant 0 : index
    %51 = vector.load %arg1[%c0_20, %c0_21, %c0_22] : memref<2x128x16xf32, #tpu.memory_space<vmem>>, vector<2x128x16xf32>
    %52 = vector.broadcast %50 : vector<2x128x1xf32> to vector<2x128x16xf32>
    %53 = arith.mulf %51, %52 : vector<2x128x16xf32>
    %c0_23 = arith.constant 0 : index
    %c0_24 = arith.constant 0 : index
    %c0_25 = arith.constant 0 : index
    %54 = vector.load %arg4[%c0_23, %c0_24, %c0_25] : memref<2x128x16xf32, #tpu.memory_space<vmem>>, vector<2x128x16xf32>
    tpu.vector_store %arg4[%c0_23, %c0_24, %c0_25], %53 {strides = array<i32>} : memref<2x128x16xf32, #tpu.memory_space<vmem>>, vector<2x128x16xf32>,
    return
  }
  func.func @transform_0(%arg0: i32) -> (i32, i32, i32) {
    %c0_i32 = arith.constant 0 : i32
    %c0_i32_0 = arith.constant 0 : i32
    %c0_i32_1 = arith.constant 0 : i32
    return %arg0, %c0_i32, %c0_i32_0 : i32, i32, i32
  }
  func.func @transform_1(%arg0: i32) -> (i32, i32) {
    %c0_i32 = arith.constant 0 : i32
    %c0_i32_0 = arith.constant 0 : i32
    %c0_i32_1 = arith.constant 0 : i32
    return %c0_i32, %c0_i32_0 : i32, i32
  }
  func.func @transform_2(%arg0: i32) -> (i32, i32) {
    %c0_i32 = arith.constant 0 : i32
    %c0_i32_0 = arith.constant 0 : i32
    %c0_i32_1 = arith.constant 0 : i32
    return %c0_i32, %c0_i32_0 : i32, i32
  }
  func.func @transform_3(%arg0: i32) -> (i32, i32, i32) {
    %c0_i32 = arith.constant 0 : i32
    %c0_i32_0 = arith.constant 0 : i32
    %c0_i32_1 = arith.constant 0 : i32
    return %arg0, %c0_i32, %c0_i32_0 : i32, i32, i32
  }
  func.func @transform_4(%arg0: i32) -> (i32, i32, i32) {
    %c0_i32 = arith.constant 0 : i32
    %c0_i32_0 = arith.constant 0 : i32
    %c0_i32_1 = arith.constant 0 : i32
    return %arg0, %c0_i32, %c0_i32_0 : i32, i32, i32
  }
}

</mosaic_0001>

<bundles_post_ra>
// kernel: tpu_custom_call.1
= control target key start
LH: loop header
LB: loop body
LE: loop exit
PB: predicated region body
PF: predicated region fallthrough
CT: control target
= control target key end

     0   :  { %vm3963_vm0 = vcmask 130048   ;;  %s3950_s0 = inlined_call_operand.vmem [shape: f32[2,128,16], index: 0, kind: input, shape index: {}]   ;;  %s3951_s1 = inlined_call_operand.vmem [shape: f32[128,128], index: 1, kind: input, shape index: {}]   ;;  %s3952_s2 = inlined_call_operand.vmem [shape: f32[1,128], index: 2, kind: input, shape index: {}]   ;;  %s3953_s3 = inlined_call_operand.vmem [shape: f32[2,128,16], index: 3, kind: output, shape index: {0}]   ;;  %s3954_s4 = inlined_call_operand.hbm [shape: f32[2,1,128], index: 4, kind: output, shape index: {1}]  }
   0x1   :  { %v33_v0 = vld [vmem:[%s3950_s0 + $0x80] sm:$0xff]  ;;  %v34_v2 = vld [vmem:[%s3950_s0 + $0x88] sm:$0xff]  ;;  %v35_v8 = vld [vmem:[%s3950_s0 + $0x90] sm:$0xff] }
   0x2   :  { %v17_v1 = vld [vmem:[%s3950_s0] sm:$0xff]  ;;  %v98_v3 = vsel %vm3963_vm0, %v33_v0, 0.0  ;;  %v18_v5 = vld [vmem:[%s3950_s0 + $0x8] sm:$0xff]  ;;  %v101_v6 = vsel %vm3963_vm0, %v34_v2, 0.0  ;;  %v19_v9 = vld [vmem:[%s3950_s0 + $0x10] sm:$0xff]  ;;  %v104_v10 = vsel %vm3963_vm0, %v35_v8, 0.0 }
   0x3   :  { %v50_v4 = vsel %vm3963_vm0, %v17_v1, 0.0  ;;  %99 = vadd.xlane.f32.xlu1 %v98_v3  ;;  %v53_v7 = vsel %vm3963_vm0, %v18_v5, 0.0  ;;  %v56_v11 = vsel %vm3963_vm0, %v19_v9, 0.0  ;;  %v36_v12 = vld [vmem:[%s3950_s0 + $0x98] sm:$0xff] }
   0x4   :  { %51 = vadd.xlane.f32.xlu0 %v50_v4  ;;  %v20_v13 = vld [vmem:[%s3950_s0 + $0x18] sm:$0xff]  ;;  %v107_v14 = vsel %vm3963_vm0, %v36_v12, 0.0 }
   0x5   :  { %v59_v15 = vsel %vm3963_vm0, %v20_v13, 0.0 }
   0x7   :  { %102 = vadd.xlane.f32.xlu1 %v101_v6 }
   0x8   :  { %54 = vadd.xlane.f32.xlu0 %v53_v7 }
   0xb   :  { %105 = vadd.xlane.f32.xlu1 %v104_v10 }
   0xc   :  { %57 = vadd.xlane.f32.xlu0 %v56_v11 }
   0xd   :  { %10 = vsyncpa [#allocation3], 0  ;;  %v37_v16 = vld [vmem:[%s3950_s0 + $0xa0] sm:$0xff]  ;;  %v193_v18 = vld [vmem:[%s3951_s1 + $0x78] sm:$0xff]  ;;  %v2482_v21 = vmov 0.0   ;;  %vm2483_vm1 = vmmov 0  }
   0xe   :  { %v21_v17 = vld [vmem:[%s3950_s0 + $0x20] sm:$0xff]  ;;  %v110_v19 = vsel %vm3963_vm0, %v37_v16, 0.0  ;;  %2306 = vmatprep.subr.mxu0 %v2482_v21  ;;  %2341 = vmatprep.subr.mxu1 %v2482_v21  ;;  %v38_v22 = vld [vmem:[%s3950_s0 + $0xa8] sm:$0xff]  ;;  %v192_v24 = vld [vmem:[%s3951_s1 + $0x70] sm:$0xff]  ;;  %vm244_vm2 = vcmask 130112   ;;  %vm251_vm3 = vcmask 195712  }
   0xf   :  { %108 = vadd.xlane.f32.xlu1 %v107_v14  ;;  %v62_v20 = vsel %vm3963_vm0, %v21_v17, 0.0  ;;  %v22_v23 = vld [vmem:[%s3950_s0 + $0x28] sm:$0xff]  ;;  %2307 = vmatpush3.xpose.msra.mxu0 %v193_v18  ;;  %v113_v25 = vsel %vm3963_vm0, %v38_v22, 0.0  ;;  %v39_v27 = vld [vmem:[%s3950_s0 + $0xb0] sm:$0xff]  ;;  %v40_v32 = vld [vmem:[%s3950_s0 + $0xb8] sm:$0xff]  ;;  %vm258_vm4 = vcmask 261312  }
  0x10   :  { %60 = vadd.xlane.f32.xlu0 %v59_v15  ;;  %2342 = vmatpush3.msra.mxu1 %v193_v18  ;;  %v65_v26 = vsel %vm3963_vm0, %v22_v23, 0.0  ;;  %v23_v28 = vld [vmem:[%s3950_s0 + $0x30] sm:$0xff]  ;;  %v191_v29 = vld [vmem:[%s3951_s1 + $0x68] sm:$0xff]  ;;  %v116_v30 = vsel %vm3963_vm0, %v39_v27, 0.0  ;;  %v24_v33 = vld [vmem:[%s3950_s0 + $0x38] sm:$0xff]  ;;  %v119_v35 = vsel %vm3963_vm0, %v40_v32, 0.0  ;;  %v233_v32 = vlaneseq }
  0x11   :  { %2308 = vmatprep.subr.mxu0 %v2482_v21  ;;  %2343 = vmatprep.subr.mxu1 %v2482_v21  ;;  %v68_v31 = vsel %vm3963_vm0, %v23_v28, 0.0  ;;  %v190_v34 = vld [vmem:[%s3951_s1 + $0x60] sm:$0xff]  ;;  %v71_v36 = vsel %vm3963_vm0, %v24_v33, 0.0  ;;  %v189_v39 = vld [vmem:[%s3951_s1 + $0x58] sm:$0xff]  ;;  %v42_v42 = vld [vmem:[%s3950_s0 + $0xc8] sm:$0xff]  ;;  %vm265_vm5 = vcmask 326912  }
  0x12   :  { %2344 = vmatpush3.msra.mxu1 %v192_v24  ;;  %v41_v37 = vld [vmem:[%s3950_s0 + $0xc0] sm:$0xff]  ;;  %v26_v43 = vld [vmem:[%s3950_s0 + $0x48] sm:$0xff]  ;;  %v188_v44 = vld [vmem:[%s3951_s1 + $0x50] sm:$0xff]  ;;  %v125_v45 = vsel %vm3963_vm0, %v42_v42, 0.0  ;;  %2338 = vmatprep.mubr.msk.f32.mxu0 %vm2483_vm1, %v2482_v21  ;;  %vm272_vm6 = vcmask 392512   ;;  %vm279_vm7 = vcmask 458112  }
  0x13   :  { %111 = vadd.xlane.f32.xlu1 %v110_v19  ;;  %2309 = vmatpush3.xpose.msra.mxu0 %v192_v24  ;;  %v25_v38 = vld [vmem:[%s3950_s0 + $0x40] sm:$0xff]  ;;  %v122_v40 = vsel %vm3963_vm0, %v41_v37, 0.0  ;;  %v77_v46 = vsel %vm3963_vm0, %v26_v43, 0.0  ;;  %v43_v47 = vld [vmem:[%s3950_s0 + $0xd0] sm:$0xff]  ;;  %v187_v49 = vld [vmem:[%s3951_s1 + $0x48] sm:$0xff]  ;;  %vm286_vm8 = vcmask 523712  }
  0x14   :  { %63 = vadd.xlane.f32.xlu0 %v62_v20  ;;  %2345 = vmatprep.subr.mxu1 %v2482_v21  ;;  %v74_v41 = vsel %vm3963_vm0, %v25_v38, 0.0  ;;  %v27_v48 = vld [vmem:[%s3950_s0 + $0x50] sm:$0xff]  ;;  %v128_v50 = vsel %vm3963_vm0, %v43_v47, 0.0  ;;  %v44_v52 = vld [vmem:[%s3950_s0 + $0xd8] sm:$0xff]  ;;  %v186_v54 = vld [vmem:[%s3951_s1 + $0x40] sm:$0xff]  ;;  %vm3991_vm9 = vcmask 589312  }
  0x15   :  { %2310 = vmatprep.subr.mxu0 %v2482_v21  ;;  %2346 = vmatpush3.msra.mxu1 %v191_v29  ;;  %v80_v51 = vsel %vm3963_vm0, %v27_v48, 0.0  ;;  %v28_v53 = vld [vmem:[%s3950_s0 + $0x58] sm:$0xff]  ;;  %v131_v55 = vsel %vm3963_vm0, %v44_v52, 0.0  ;;  %v45_v57 = vld [vmem:[%s3950_s0 + $0xe0] sm:$0xff]  ;;  %v46_v62 = vld [vmem:[%s3950_s0 + $0xe8] sm:$0xff]  ;;  %vm3989_vm10 = vcmask 654912  }
  0x16   :  { %2347 = vmatprep.subr.mxu1 %v2482_v21  ;;  %v83_v56 = vsel %vm3963_vm0, %v28_v53, 0.0  ;;  %v29_v58 = vld [vmem:[%s3950_s0 + $0x60] sm:$0xff]  ;;  %v185_v59 = vld [vmem:[%s3951_s1 + $0x38] sm:$0xff]  ;;  %v134_v60 = vsel %vm3963_vm0, %v45_v57, 0.0  ;;  %v30_v63 = vld [vmem:[%s3950_s0 + $0x68] sm:$0xff]  ;;  %v137_v1 = vsel %vm3963_vm0, %v46_v62, 0.0  ;;  %2373 = vmatprep.mubr.msk.f32.mxu1 %vm2483_vm1, %v2482_v21 }
  0x17   :  { %114 = vadd.xlane.f32.xlu1 %v113_v25  ;;  %2311 = vmatpush3.xpose.msra.mxu0 %v191_v29  ;;  %v86_v61 = vsel %vm3963_vm0, %v29_v58, 0.0  ;;  %v184_v0 = vld [vmem:[%s3951_s1 + $0x30] sm:$0xff]  ;;  %v89_v2 = vsel %vm3963_vm0, %v30_v63, 0.0  ;;  %v183_v5 = vld [vmem:[%s3951_s1 + $0x28] sm:$0xff]  ;;  %v48_v8 = vld [vmem:[%s3950_s0 + $0xf8] sm:$0xff]  ;;  %vm3988_vm11 = vcmask 720512  }
  0x18   :  { %66 = vadd.xlane.f32.xlu0 %v65_v26  ;;  %2312 = vmatprep.subr.mxu0 %v2482_v21  ;;  %v47_v3 = vld [vmem:[%s3950_s0 + $0xf0] sm:$0xff]  ;;  %v32_v9 = vld [vmem:[%s3950_s0 + $0x78] sm:$0xff]  ;;  %v182_v10 = vld [vmem:[%s3951_s1 + $0x20] sm:$0xff]  ;;  %v143_v11 = vsel %vm3963_vm0, %v48_v8, 0.0  ;;  %vm3990_vm12 = vcmask 786112   ;;  %vm321_vm13 = vcmask 851712  }
  0x19   :  { %2348 = vmatpush3.msra.mxu1 %v190_v34  ;;  %v31_v4 = vld [vmem:[%s3950_s0 + $0x70] sm:$0xff]  ;;  %v140_v6 = vsel %vm3963_vm0, %v47_v3, 0.0  ;;  %v95_v12 = vsel %vm3963_vm0, %v32_v9, 0.0  ;;  %v181_v13 = vld [vmem:[%s3951_s1 + $0x18] sm:$0xff]  ;;  %v179_v15 = vld [vmem:[%s3951_s1 + $0x8] sm:$0xff]  ;;  %vm3966_vm14 = vcmask 917312  }
  0x1a   :  { %2349 = vmatprep.subr.mxu1 %v2482_v21  ;;  %v92_v7 = vsel %vm3963_vm0, %v31_v4, 0.0  ;;  %v180_v14 = vld [vmem:[%s3951_s1 + $0x10] sm:$0xff]  ;;  %v178_v16 = vld [vmem:[%s3951_s1] sm:$0xff]  ;;  %vm3967_vm15 = vcmask 982912   ;;  %vm3969_vm1 = vcmask 1048512   ;;  %vm3968_vm0 = vcmask 1041409  }
  0x1b   :  { %117 = vadd.xlane.f32.xlu1 %v116_v30  ;;  %2313 = vmatpush3.xpose.msra.mxu0 %v190_v34  ;;  %v2733_v34 = vand.u32 127, %v233_v32 }
  0x1c   :  { %69 = vadd.xlane.f32.xlu0 %v68_v31  ;;  %2314 = vmatprep.subr.mxu0 %v2482_v21 }
  0x1d   :  { %2350 = vmatpush3.msra.mxu1 %v189_v39  ;;  %v246_v37 = vadd.s32 4294967280, %v2733_v34  ;;  %v253_v38 = vadd.s32 4294967272, %v2733_v34  ;;  %v267_v42 = vadd.s32 4294967256, %v2733_v34  ;;  %v274_v43 = vadd.s32 4294967248, %v2733_v34 }
  0x1e   :  { %2351 = vmatprep.subr.mxu1 %v2482_v21  ;;  %v302_v48 = vadd.s32 4294967216, %v2733_v34  ;;  %v316_v57 = vadd.s32 4294967200, %v2733_v34  ;;  %v323_v58 = vadd.s32 4294967192, %v2733_v34 }
  0x1f   :  { %120 = vadd.xlane.f32.xlu1 %v119_v35  ;;  %2315 = vmatpush3.xpose.msra.mxu0 %v189_v39  ;;  %v2735_v35 = vshrl.u32 %v233_v32, 7 }
  0x20   :  { %72 = vadd.xlane.f32.xlu0 %v71_v36  ;;  %2316 = vmatprep.subr.mxu0 %v2482_v21  ;;  %v239_v36 = vadd.s32 4294967288, %v2733_v34 }
  0x21   :  { %2352 = vmatpush3.msra.mxu1 %v188_v44  ;;  %v2752_v47 = vsub.s32 %v2733_v34, %v2735_v35  ;;  %v2763_v52 = vsub.s32 %v253_v38, %v2735_v35 }
  0x22   :  { %2353 = vmatprep.subr.mxu1 %v2482_v21 }
  0x23   :  { %123 = vadd.xlane.f32.xlu1 %v122_v40  ;;  %2317 = vmatpush3.xpose.msra.mxu0 %v188_v44  ;;  %v281_v44 = vadd.s32 4294967240, %v2733_v34 }
  0x24   :  { %75 = vadd.xlane.f32.xlu0 %v74_v41  ;;  %2318 = vmatprep.subr.mxu0 %v2482_v21  ;;  %v260_v41 = vadd.s32 4294967264, %v2733_v34 }
  0x25   :  { %2354 = vmatpush3.msra.mxu1 %v187_v49 }
  0x26   :  { %2355 = vmatprep.subr.mxu1 %v2482_v21 }
  0x27   :  { %126 = vadd.xlane.f32.xlu1 %v125_v45  ;;  %2319 = vmatpush3.xpose.msra.mxu0 %v187_v49  ;;  %v288_v45 = vadd.s32 4294967232, %v2733_v34  ;;  %v309_v49 = vadd.s32 4294967208, %v2733_v34 }
  0x28   :  { %78 = vadd.xlane.f32.xlu0 %v77_v46  ;;  %2320 = vmatprep.subr.mxu0 %v2482_v21  ;;  %v295_v46 = vadd.s32 4294967224, %v2733_v34 }
  0x29   :  { %2356 = vmatpush3.msra.mxu1 %v186_v54 }
  0x2a   :  { %2357 = vmatprep.subr.mxu1 %v2482_v21  ;;  %v2787_v62 = vsub.s32 %v295_v46, %v2735_v35 }
  0x2b   :  { %129 = vadd.xlane.f32.xlu1 %v128_v50  ;;  %2321 = vmatpush3.xpose.msra.mxu0 %v186_v54  ;;  %v2757_v50 = vsub.s32 %v239_v36, %v2735_v35 }
  0x2c   :  { %81 = vadd.xlane.f32.xlu0 %v80_v51  ;;  %2322 = vmatprep.subr.mxu0 %v2482_v21  ;;  %v2760_v51 = vsub.s32 %v246_v37, %v2735_v35  ;;  %4030 = vst [vmem:[#allocation6_spill] sm:$0xff] %v2787_v62 }
  0x2d   :  { %2358 = vmatpush3.msra.mxu1 %v185_v59  ;;  %4029 = vst [vmem:[#allocation5_spill] sm:$0xff] %v2757_v50 }
  0x2e   :  { %2359 = vmatprep.subr.mxu1 %v2482_v21 }
  0x2f   :  { %132 = vadd.xlane.f32.xlu1 %v131_v55  ;;  %2323 = vmatpush3.xpose.msra.mxu0 %v185_v59  ;;  %v2770_v55 = vsub.s32 %v260_v41, %v2735_v35  ;;  %v2778_v59 = vsub.s32 %v274_v43, %v2735_v35 }
  0x30   :  { %84 = vadd.xlane.f32.xlu0 %v83_v56  ;;  %2324 = vmatprep.subr.mxu0 %v2482_v21  ;;  %v2773_v56 = vsub.s32 %v267_v42, %v2735_v35 }
  0x31   :  { %2360 = vmatpush3.msra.mxu1 %v184_v0 }
  0x32   :  { %2361 = vmatprep.subr.mxu1 %v2482_v21 }
  0x33   :  { %135 = vadd.xlane.f32.xlu1 %v134_v60  ;;  %2325 = vmatpush3.xpose.msra.mxu0 %v184_v0  ;;  %v2781_v60 = vsub.s32 %v281_v44, %v2735_v35 }
  0x34   :  { %87 = vadd.xlane.f32.xlu0 %v86_v61  ;;  %2326 = vmatprep.subr.mxu0 %v2482_v21  ;;  %v2784_v61 = vsub.s32 %v288_v45, %v2735_v35 }
  0x35   :  { %2362 = vmatpush3.msra.mxu1 %v183_v5 }
  0x36   :  { %2363 = vmatprep.subr.mxu1 %v2482_v21 }
  0x37   :  { %138 = vadd.xlane.f32.xlu1 %v137_v1  ;;  %2327 = vmatpush3.xpose.msra.mxu0 %v183_v5  ;;  %v2794_v1 = vsub.s32 %v302_v48, %v2735_v35 }
  0x38   :  { %90 = vadd.xlane.f32.xlu0 %v89_v2  ;;  %2328 = vmatprep.subr.mxu0 %v2482_v21  ;;  %v2797_v2 = vsub.s32 %v309_v49, %v2735_v35 }
  0x39   :  { %2364 = vmatpush3.msra.mxu1 %v182_v10  ;;  %4031 = vst [vmem:[#allocation7_spill] sm:$0xff] %v2794_v1 }
  0x3a   :  { %2365 = vmatprep.subr.mxu1 %v2482_v21  ;;  %4032 = vst [vmem:[#allocation8_spill] sm:$0xff] %v2797_v2 }
  0x3b   :  { %141 = vadd.xlane.f32.xlu1 %v140_v6  ;;  %2329 = vmatpush3.xpose.msra.mxu0 %v182_v10 }
  0x3c   :  { %93 = vadd.xlane.f32.xlu0 %v92_v7  ;;  %2330 = vmatprep.subr.mxu0 %v2482_v21 }
  0x3d   :  { %2366 = vmatpush3.msra.mxu1 %v181_v13 }
  0x3e   :  { %2367 = vmatprep.subr.mxu1 %v2482_v21 }
  0x3f   :  { %144 = vadd.xlane.f32.xlu1 %v143_v11  ;;  %2331 = vmatpush3.xpose.msra.mxu0 %v181_v13  ;;  %v2812_v11 = vsub.s32 %v316_v57, %v2735_v35 }
  0x40   :  { %96 = vadd.xlane.f32.xlu0 %v95_v12  ;;  %2332 = vmatprep.subr.mxu0 %v2482_v21  ;;  %v2815_v12 = vsub.s32 %v323_v58, %v2735_v35 }
  0x41   :  { %2368 = vmatpush3.msra.mxu1 %v180_v14  ;;  %4033 = vst [vmem:[#allocation9_spill] sm:$0xff] %v2812_v11 }
  0x42   :  { %2369 = vmatprep.subr.mxu1 %v2482_v21 }
  0x43   :  { %2333 = vmatpush3.xpose.msra.mxu0 %v180_v14  ;;  %2370 = vmatpush3.msra.mxu1 %v179_v15 }
  0x44   :  { %2334 = vmatprep.subr.mxu0 %v2482_v21  ;;  %2371 = vmatprep.subr.mxu1 %v2482_v21 }
  0x45   :  { %2372 = vmatpush3.msra.mxu1 %v178_v16 }
  0x47   :  { %2335 = vmatpush3.xpose.msra.mxu0 %v179_v15  ;;  %v330_v15 = vadd.s32 4294967184, %v2733_v34 }
  0x48   :  { %2336 = vmatprep.subr.mxu0 %v2482_v21 }
  0x49   :  { %v2854_v41 = vsub.s32 %v330_v15, %v2735_v35 }
  0x4b   :  { %2337 = vmatpush3.xpose.msra.mxu0 %v178_v16  ;;  %v337_v16 = vadd.s32 4294967176, %v2733_v34  ;;  %4034 = vst [vmem:[#allocation10_spill] sm:$0xff] %v2854_v41 }
  0x4d   :  { %v2857_v42 = vsub.s32 %v337_v16, %v2735_v35 }
  0x8c   :  { %v100_v17 = vpop.xlane.xlu1 %99 }
  0x8d   :  { %v52_v18 = vpop.xlane.xlu0 %51  ;;  %v2799_v3 = vmul.f32 0.0625, %v100_v17 }
  0x8e   :  { %v2801_v4 = vmul.f32 0.0625, %v52_v18 }
  0x90   :  { %v103_v19 = vpop.xlane.xlu1 %102 }
  0x91   :  { %v55_v20 = vpop.xlane.xlu0 %54  ;;  %v2789_v63 = vmul.f32 0.0625, %v103_v19 }
  0x92   :  { %v2791_v0 = vmul.f32 0.0625, %v55_v20 }
  0x93   :  { %v351_v17 = vrot.slane %v2789_v63, %v2757_v50 }
  0x94   :  { %v106_v22 = vpop.xlane.xlu1 %105  ;;  %v243_v18 = vrot.slane %v2791_v0, %v2757_v50 }
  0x95   :  { %v58_v23 = vpop.xlane.xlu0 %57  ;;  %v2803_v5 = vmul.f32 0.0625, %v106_v22  ;;  %v347_v22 = vrot.slane %v2799_v3, %v2752_v47 }
  0x96   :  { %v2805_v6 = vmul.f32 0.0625, %v58_v23  ;;  %v238_v23 = vrot.slane %v2801_v4, %v2752_v47 }
  0x97   :  { %v352_v43 = vsel %vm244_vm2, %v351_v17, %v347_v22 }
  0x98   :  { %v109_v24 = vpop.xlane.xlu1 %108 }
  0x99   :  { %v61_v25 = vpop.xlane.xlu0 %60  ;;  %v2807_v9 = vmul.f32 0.0625, %v109_v24  ;;  %v356_v24 = vrot.slane %v2803_v5, %v2760_v51 }
  0x9a   :  { %v2809_v10 = vmul.f32 0.0625, %v61_v25  ;;  %v250_v25 = vrot.slane %v2805_v6, %v2760_v51 }
  0x9b   :  { %v357_v45 = vsel %vm251_vm3, %v356_v24, %v352_v43 }
  0x9c   :  { %v112_v26 = vpop.xlane.xlu1 %111 }
  0x9d   :  { %v64_v27 = vpop.xlane.xlu0 %63  ;;  %v2817_v13 = vmul.f32 0.0625, %v112_v26 }
  0x9e   :  { %v2819_v14 = vmul.f32 0.0625, %v64_v27 }
  0x9f   :  { %v366_v37 = vrot.slane %v2817_v13, %v2770_v55 }
  0xa0   :  { %v115_v28 = vpop.xlane.xlu1 %114  ;;  %v264_v38 = vrot.slane %v2819_v14, %v2770_v55 }
  0xa1   :  { %v67_v29 = vpop.xlane.xlu0 %66  ;;  %v2827_v19 = vmul.f32 0.0625, %v115_v28  ;;  %v361_v28 = vrot.slane %v2807_v9, %v2763_v52 }
  0xa2   :  { %v2829_v20 = vmul.f32 0.0625, %v67_v29  ;;  %v257_v29 = vrot.slane %v2809_v10, %v2763_v52 }
  0xa3   :  { %v362_v15 = vsel %vm258_vm4, %v361_v28, %v357_v45 }
  0xa4   :  { %v2725_v30 = vpop.xlane.xlu1 %117  ;;  %v271_v44 = vrot.slane %v2829_v20, %v2773_v56 }
  0xa5   :  { %v2727_v31 = vpop.xlane.xlu0 %69  ;;  %v2844_v32 = vmul.f32 0.0625, %v2725_v30  ;;  %v245_v30 = vsel %vm244_vm2, %v243_v18, %v238_v23 }
  0xa6   :  { %v2847_v36 = vmul.f32 0.0625, %v2727_v31  ;;  %v371_v31 = vrot.slane %v2827_v19, %v2773_v56  ;;  %v252_v46 = vsel %vm251_vm3, %v250_v25, %v245_v30 }
  0xa7   :  { %v259_v16 = vsel %vm258_vm4, %v257_v29, %v252_v46  ;;  %v376_v17 = vrot.slane %v2844_v32, %v2778_v59 }
  0xa8   :  { %v2729_v33 = vpop.xlane.xlu1 %120  ;;  %v278_v18 = vrot.slane %v2847_v36, %v2778_v59  ;;  %v266_v22 = vsel %vm265_vm5, %v264_v38, %v259_v16 }
  0xa9   :  { %v2731_v21 = vpop.xlane.xlu0 %72  ;;  %v2868_v48 = vmul.f32 0.0625, %v2729_v33  ;;  %v367_v33 = vsel %vm265_vm5, %v366_v37, %v362_v15  ;;  %v273_v25 = vsel %vm272_vm6, %v271_v44, %v266_v22 }
  0xaa   :  { %v2871_v49 = vmul.f32 0.0625, %v2731_v21  ;;  %v372_v24 = vsel %vm272_vm6, %v371_v31, %v367_v33  ;;  %v280_v31 = vsel %vm279_vm7, %v278_v18, %v273_v25 }
  0xab   :  { %v381_v37 = vrot.slane %v2868_v48, %v2781_v60 }
  0xac   :  { %v2740_v39 = vpop.xlane.xlu1 %123 }
  0xad   :  { %v2742_v40 = vpop.xlane.xlu0 %75  ;;  %v2882_v21 = vmul.f32 0.0625, %v2740_v39  ;;  %v285_v39 = vrot.slane %v2871_v49, %v2781_v60 }
  0xae   :  { %v2885_v23 = vmul.f32 0.0625, %v2742_v40 }
  0xaf   :  { %v386_v45 = vrot.slane %v2882_v21, %v2784_v61  ;;  %v287_v18 = vsel %vm286_vm8, %v285_v39, %v280_v31 }
  0xb0   :  { %v2765_v53 = vpop.xlane.xlu1 %126 }
  0xb1   :  { %v2767_v54 = vpop.xlane.xlu0 %78  ;;  %v2890_v28 = vmul.f32 0.0625, %v2765_v53  ;;  %v377_v53 = vsel %vm279_vm7, %v376_v17, %v372_v24 }
  0xb2   :  { %v2893_v29 = vmul.f32 0.0625, %v2767_v54  ;;  %v382_v17 = vsel %vm286_vm8, %v381_v37, %v377_v53 }
  0xb3   :  { %v391_v15 = vrot.slane %v2890_v28, %v2787_v62  ;;  %v387_v37 = vsel %vm3991_vm9, %v386_v45, %v382_v17 }
  0xb4   :  { %v130_v7 = vpop.xlane.xlu1 %129 }
  0xb5   :  { %v82_v8 = vpop.xlane.xlu0 %81  ;;  %v2899_v40 = vmul.f32 0.0625, %v130_v7  ;;  %v292_v7 = vrot.slane %v2885_v23, %v2784_v61 }
  0xb6   :  { %v2901_v38 = vmul.f32 0.0625, %v82_v8 }
  0xb7   :  { %v294_v39 = vsel %vm3991_vm9, %v292_v7, %v287_v18 }
  0xb8   :  { %v133_v26 = vpop.xlane.xlu1 %132 }
  0xb9   :  { %v85_v27 = vpop.xlane.xlu0 %84  ;;  %v2905_v54 = vmul.f32 0.0625, %v133_v26  ;;  %v299_v26 = vrot.slane %v2893_v29, %v2787_v62 }
  0xba   :  { %v2907_v44 = vmul.f32 0.0625, %v85_v27 }
  0xbb   :  { %v401_v24 = vrot.slane %v2905_v54, %v2797_v2  ;;  %v301_v62 = vsel %vm3989_vm10, %v299_v26, %v294_v39 }
  0xbc   :  { %v136_v57 = vpop.xlane.xlu1 %135  ;;  %v313_v25 = vrot.slane %v2907_v44, %v2797_v2 }
  0xbd   :  { %v88_v58 = vpop.xlane.xlu0 %87  ;;  %v2913_v8 = vmul.f32 0.0625, %v136_v57  ;;  %v396_v57 = vrot.slane %v2899_v40, %v2794_v1 }
  0xbe   :  { %v2915_v46 = vmul.f32 0.0625, %v88_v58  ;;  %v306_v58 = vrot.slane %v2901_v38, %v2794_v1  ;;  %v392_v1 = vsel %vm3989_vm10, %v391_v15, %v387_v37 }
  0xbf   :  { %v406_v53 = vrot.slane %v2913_v8, %v2812_v11  ;;  %v397_v45 = vsel %vm3988_vm11, %v396_v57, %v392_v1 }
  0xc0   :  { %v139_v43 = vpop.xlane.xlu1 %138  ;;  %v320_v31 = vrot.slane %v2915_v46, %v2812_v11  ;;  %v308_v7 = vsel %vm3988_vm11, %v306_v58, %v301_v62  ;;  %v402_v26 = vsel %vm3990_vm12, %v401_v24, %v397_v45 }
  0xc1   :  { %v91_v30 = vpop.xlane.xlu0 %90  ;;  %v2921_v16 = vmul.f32 0.0625, %v139_v43  ;;  %v315_v37 = vsel %vm3990_vm12, %v313_v25, %v308_v7  ;;  %v407_v1 = vsel %vm321_vm13, %v406_v53, %v402_v26 }
  0xc2   :  { %v2923_v27 = vmul.f32 0.0625, %v91_v30  ;;  %v322_v62 = vsel %vm321_vm13, %v320_v31, %v315_v37 }
  0xc4   :  { %v142_v33 = vpop.xlane.xlu1 %141 }
  0xc5   :  { %v94_v22 = vpop.xlane.xlu0 %93  ;;  %v2935_v43 = vmul.f32 0.0625, %v142_v33  ;;  %v411_v33 = vrot.slane %v2921_v16, %v2815_v12 }
  0xc6   :  { %v2937_v30 = vmul.f32 0.0625, %v94_v22  ;;  %v327_v22 = vrot.slane %v2923_v27, %v2815_v12 }
  0xc7   :  { %v416_v17 = vrot.slane %v2935_v43, %v2854_v41  ;;  %v412_v57 = vsel %vm3966_vm14, %v411_v33, %v407_v1  ;;  %v2484_v33 = vmov 1966171168  }
  0xc8   :  { %v334_v18 = vrot.slane %v2937_v30, %v2854_v41  ;;  %v145_v11 = vpop.xlane.xlu1 %144  ;;  %v329_v58 = vsel %vm3966_vm14, %v327_v22, %v322_v62  ;;  %v498_v7 = vunpack.c.l.s4 %v2484_v33  ;;  %vm523_vm14 = vcmp.lt.s32.totalorder %v2733_v34, 10 }
  0xc9   :  { %v97_v15 = vpop.xlane.xlu0 %96  ;;  %v2959_v39 = vmul.f32 0.0625, %v145_v11  ;;  %v417_v25 = vsel %vm3967_vm15, %v416_v17, %v412_v57 }
  0xca   :  { %v2961_v2 = vmul.f32 0.0625, %v97_v15  ;;  %v336_v11 = vsel %vm3967_vm15, %v334_v18, %v329_v58  ;;  %v499_v22 = vunpack.c.0.s8 %v498_v7  ;;  %v2267_v15 = vld [vmem:[%s3952_s2] ss:$0 sm:$0xff]  ;;  %vm525_vm15 = vcmask 1041408   ;;  %s2487_s2 = smov [#allocation2]  }
  0xcb   :  { %v421_v41 = vrot.slane %v2959_v39, %v2857_v42  ;;  %s2254_s8 = sshll.u32 %s2487_s2, 4  ;;  %s2255_s8 = int_to_ptr.vmem [resolvable:$true] %s2254_s8 }
  0xcc   :  { %v341_v24 = vrot.slane %v2961_v2, %v2857_v42  ;;  %v502_v26 = vsub.s32 %v499_v22, %v2735_v35  ;;  %s2460_s9 = scalar_lea.vmem %s2255_s8, 32  ;;  %p2465_p1 = scmp.lt.s32.totalorder %s2255_s8, %s2255_s8 }
  0xcd   :  { %v422_v31 = vsel %vm3969_vm1, %v421_v41, %v417_v25  ;;  %p2461_p0 = scmp.ne.s32.totalorder %s2255_s8, %s2460_s9  ;;  %p2466_p2 = scmp.lt.s32.totalorder %s2460_s9, %s2460_s9 }
  0xce   :  { %v343_v53 = vsel %vm3969_vm1, %v341_v24, %v336_v11 }
  0xcf   :  { %v424_v45 = vsel %vm3968_vm0, %v422_v31, %v343_v53  ;;  %p2467_p3 = por %p2466_p2, %p2465_p1 }
  0xd0   :  { %2339 = vmatmul.mubr.f32.vlgmr.msra.gmra.mxu0 %v424_v45 }
  0xd1   :  { %p2468_p4 = pnand %p2467_p3, %p2461_p0 }
 0x190   :  { %v492_v37 = vpop.f32.mrf.mxu0 }
 0x191   :  { %v493_v17 = vadd.f32 %v2267_v15, %v492_v37 }
 0x192   :  { %v2340_v18 = vpop.f32.mrf.mxu0 }
 0x193   :  { %v503_v1 = vrot.slane %v493_v17, %v502_v26  ;;  %v524_v41 = vsel %vm523_vm14, %v493_v17, -1e+30  ;;  %v2485_v18 = vmov 1.0  }
 0x194   :  { %v526_v62 = vsel %vm525_vm15, %v524_v41, -inf }
 0x195   :  { %v504_v57 = vcombine.high %v503_v1, %v503_v1  ;;  %2268 = vst.sshfl [vmem:[#allocation2] sm:$0x1 pattern:$0x73625140] %v503_v1  ;;  %527 = vmax.xlane.f32.xlu0 %v526_v62  ;;  %v2486_v1 = vmov 0  }
 0x196   :  { %2385 = vset.pattern.permute.xlu0 %v2486_v1  ;;  %2384 = vset.pattern.permute.xlu1 %v2486_v1 }
 0x197   :  { %2269 = vst.sshfl [vmem:[#allocation2 + $0x1] sm:$0x1 pattern:$0x73625140] %v504_v57 }
 0x21e   :  { %v528_v58 = vpop.xlane.xlu0 %527 }
 0x21f   :  { %vm529_vm0 = vcmp.eq.f32.partialorder %v524_v41, %v528_v58  ;;  %v2986_v41 = vsub.s32 0, %v2735_v35 }
 0x220   :  { %v530_v24 = vsel %vm529_vm0, %v2733_v34, 2147483647  ;;  %vm4058_vm0 = vcmask 917312  }
 0x221   :  { %v531_v11 = vsel %vm525_vm15, %v530_v24, 2147483647  ;;  %v2990_v24 = vsub.s32 1, %v2735_v35 }
 0x222   :  { %v533_v25 = vshra.s32 %v531_v11, 16  ;;  %v532_v31 = vand.u32 65535, %v531_v11 }
 0x224   :  { %v535_v53 = vcvt.s32.f32 %v533_v25  ;;  %v534_v33 = vcvt.s32.f32 %v532_v31 }
 0x226   :  { %536 = vmin.xlane.f32.xlu1 %v535_v53 }
 0x2af   :  { %v537_v45 = vpop.xlane.xlu1 %536 }
 0x2b0   :  { %vm538_vm1 = vcmp.eq.f32.partialorder %v535_v53, %v537_v45  ;;  %v543_v22 = vcvt.f32.s32 %v537_v45 }
 0x2b1   :  { %v539_v7 = vsel %vm538_vm1, %v534_v33, inf  ;;  %vm4059_vm1 = vmmov %vm4058_vm0 }
 0x2b2   :  { %540 = vmin.xlane.f32.xlu0 %v539_v7  ;;  %v544_v26 = vshll.u32 %v543_v22, 16 }
 0x33b   :  { %v541_v15 = vpop.xlane.xlu0 %540 }
 0x33c   :  { %v542_v37 = vcvt.f32.s32 %v541_v15 }
 0x33e   :  { %v545_v17 = vadd.s32 %v544_v26, %v542_v37 }
 0x340   :  { %vm546_vm14 = vcmp.eq.s32.totalorder %v2733_v34, %v545_v17 }
 0x341   :  { %2374 = vmatmul.mubr.msk.f32.vlgmr.msra.gmra.mxu1 %vm546_vm14, %v2485_v18  ;;  %vm4060_vm14 = vcmask 982912  }
 0x401   :  { %v615_v62 = vpop.f32.mrf.mxu1 }
 0x402   :  { %v623_v57 = vrot.slane %v615_v62, %v2986_v41  ;;  %v690_v34 = vrot.slane %v615_v62, %v2990_v24 }
 0x403   :  { %v2375_v58 = vpop.f32.mrf.mxu1 }
 0x404   :  { %629 = vbcast.lane.b32.xlu0 %v623_v57, 264  ;;  %625 = vbcast.lane.b32.xlu1 %v623_v57, 256 }
 0x408   :  { %645 = vbcast.lane.b32.xlu0 %v623_v57, 296  ;;  %633 = vbcast.lane.b32.xlu1 %v623_v57, 272 }
 0x40c   :  { %653 = vbcast.lane.b32.xlu0 %v623_v57, 312  ;;  %637 = vbcast.lane.b32.xlu1 %v623_v57, 280 }
 0x410   :  { %692 = vbcast.lane.b32.xlu0 %v690_v34, 256  ;;  %641 = vbcast.lane.b32.xlu1 %v623_v57, 288 }
 0x414   :  { %700 = vbcast.lane.b32.xlu0 %v690_v34, 272  ;;  %649 = vbcast.lane.b32.xlu1 %v623_v57, 304 }
 0x418   :  { %708 = vbcast.lane.b32.xlu0 %v690_v34, 288  ;;  %657 = vbcast.lane.b32.xlu1 %v623_v57, 320 }
 0x41c   :  { %716 = vbcast.lane.b32.xlu0 %v690_v34, 304  ;;  %696 = vbcast.lane.b32.xlu1 %v690_v34, 264 }
 0x420   :  { %724 = vbcast.lane.b32.xlu0 %v690_v34, 320  ;;  %704 = vbcast.lane.b32.xlu1 %v690_v34, 280 }
 0x424   :  { %728 = vbcast.lane.b32.xlu0 %v690_v34, 328  ;;  %712 = vbcast.lane.b32.xlu1 %v690_v34, 296 }
 0x428   :  { %732 = vbcast.lane.b32.xlu0 %v690_v34, 336  ;;  %720 = vbcast.lane.b32.xlu1 %v690_v34, 312 }
 0x42c   :  { %736 = vbcast.lane.b32.xlu0 %v690_v34, 344  ;;  %661 = vbcast.lane.b32.xlu1 %v623_v57, 328 }
 0x430   :  { %740 = vbcast.lane.b32.xlu0 %v690_v34, 352  ;;  %665 = vbcast.lane.b32.xlu1 %v623_v57, 336 }
 0x434   :  { %744 = vbcast.lane.b32.xlu0 %v690_v34, 360  ;;  %669 = vbcast.lane.b32.xlu1 %v623_v57, 344 }
 0x438   :  { %748 = vbcast.lane.b32.xlu0 %v690_v34, 368  ;;  %673 = vbcast.lane.b32.xlu1 %v623_v57, 352 }
 0x43c   :  { %752 = vbcast.lane.b32.xlu0 %v690_v34, 376  ;;  %677 = vbcast.lane.b32.xlu1 %v623_v57, 360 }
 0x440   :  { %681 = vbcast.lane.b32.xlu1 %v623_v57, 368 }
 0x444   :  { %685 = vbcast.lane.b32.xlu1 %v623_v57, 376 }
 0x476   :  { %v630_v35 = vpop.permute.xlu0 %629  ;;  %v626_v11 = vpop.permute.xlu1 %625 }
 0x477   :  { %v2994_v25 = vmul.f32 %v630_v35, %v2791_v0  ;;  %v2997_v53 = vmul.f32 %v626_v11, %v2801_v4 }
 0x479   :  { %v819_v31 = vmul.f32 %v2994_v25, %v2994_v25  ;;  %v818_v45 = vmul.f32 %v2997_v53, %v2997_v53 }
 0x47a   :  { %v646_v33 = vpop.permute.xlu0 %645  ;;  %v634_v7 = vpop.permute.xlu1 %633 }
 0x47b   :  { %v3004_v22 = vmul.f32 %v634_v7, %v2805_v6  ;;  %886 = vperm.xlu0 %2385, %v819_v31   ;;  %883 = vperm.xlu1 %2384, %v818_v45  }
 0x47d   :  { %v820_v0 = vmul.f32 %v3004_v22, %v3004_v22 }
 0x47e   :  { %v654_v15 = vpop.permute.xlu0 %653  ;;  %v638_v26 = vpop.permute.xlu1 %637 }
 0x47f   :  { %v3009_v4 = vmul.f32 %v638_v26, %v2809_v10  ;;  %889 = vperm.xlu1 %2384, %v820_v0  }
 0x481   :  { %v821_v37 = vmul.f32 %v3009_v4, %v3009_v4 }
 0x482   :  { %v693_v17 = vpop.permute.xlu0 %692  ;;  %v642_v18 = vpop.permute.xlu1 %641 }
 0x483   :  { %v3014_v1 = vmul.f32 %v693_v17, %v2799_v3  ;;  %892 = vperm.xlu1 %2384, %v821_v37   ;;  %v3022_v10 = vmul.f32 %v642_v18, %v2819_v14  ;;  %v3027_v3 = vmul.f32 %v646_v33, %v2829_v20 }
 0x485   :  { %4035 = vst [vmem:[#allocation11_spill] sm:$0xff] %v3014_v1  ;;  %v834_v6 = vmul.f32 %v3014_v1, %v3014_v1  ;;  %v822_v31 = vmul.f32 %v3022_v10, %v3022_v10  ;;  %v823_v14 = vmul.f32 %v3027_v3, %v3027_v3 }
 0x486   :  { %v701_v62 = vpop.permute.xlu0 %700  ;;  %v650_v57 = vpop.permute.xlu1 %649 }
 0x487   :  { %v3019_v58 = vmul.f32 %v701_v62, %v2803_v5  ;;  %931 = vperm.xlu0 %2385, %v834_v6   ;;  %v3037_v0 = vmul.f32 %v650_v57, %v2847_v36 }
 0x489   :  { %v836_v34 = vmul.f32 %v3019_v58, %v3019_v58  ;;  %v824_v17 = vmul.f32 %v3037_v0, %v3037_v0 }
 0x48a   :  { %v709_v35 = vpop.permute.xlu0 %708  ;;  %v658_v11 = vpop.permute.xlu1 %657 }
 0x48b   :  { %937 = vperm.xlu0 %2385, %v836_v34   ;;  %v3050_v18 = vmul.f32 %v709_v35, %v2817_v13 }
 0x48d   :  { %v838_v62 = vmul.f32 %v3050_v18, %v3050_v18 }
 0x48e   :  { %v717_v45 = vpop.permute.xlu0 %716  ;;  %v697_v7 = vpop.permute.xlu1 %696 }
 0x48f   :  { %v3032_v5 = vmul.f32 %v697_v7, %v2789_v63  ;;  %895 = vperm.xlu0 %2385, %v822_v31   ;;  %v3045_v63 = vmul.f32 %v654_v15, %v2871_v49  ;;  %v3059_v49 = vmul.f32 %v658_v11, %v2885_v23  ;;  %v3067_v35 = vmul.f32 %v717_v45, %v2844_v32 }
 0x491   :  { %4036 = vst [vmem:[#allocation12_spill] sm:$0xff] %v3032_v5  ;;  %v835_v26 = vmul.f32 %v3032_v5, %v3032_v5  ;;  %4038 = vst [vmem:[#allocation14_spill] sm:$0xff] %v3059_v49  ;;  %v826_v34 = vmul.f32 %v3059_v49, %v3059_v49  ;;  %v840_v11 = vmul.f32 %v3067_v35, %v3067_v35 }
 0x492   :  { %v705_v20 = vpop.permute.xlu1 %704  ;;  %v725_v37 = vpop.permute.xlu0 %724 }
 0x493   :  { %v3042_v33 = vmul.f32 %v705_v20, %v2807_v9  ;;  %898 = vperm.xlu0 %2385, %v823_v14   ;;  %934 = vperm.xlu1 %2384, %v835_v26   ;;  %v825_v9 = vmul.f32 %v3045_v63, %v3045_v63 }
 0x495   :  { %4037 = vst [vmem:[#allocation13_spill] sm:$0xff] %v3042_v33  ;;  %v837_v36 = vmul.f32 %v3042_v33, %v3042_v33 }
 0x496   :  { %v713_v6 = vpop.permute.xlu1 %712  ;;  %v729_v13 = vpop.permute.xlu0 %728 }
 0x497   :  { %901 = vperm.xlu0 %2385, %v824_v17   ;;  %940 = vperm.xlu1 %2384, %v837_v36   ;;  %v3062_v15 = vmul.f32 %v713_v6, %v2827_v19 }
 0x499   :  { %4039 = vst [vmem:[#allocation15_spill] sm:$0xff] %v3062_v15  ;;  %v839_v31 = vmul.f32 %v3062_v15, %v3062_v15 }
 0x49a   :  { %v721_v57 = vpop.permute.xlu1 %720  ;;  %v733_v19 = vpop.permute.xlu0 %732 }
 0x49b   :  { %904 = vperm.xlu0 %2385, %v825_v9   ;;  %943 = vperm.xlu1 %2384, %v838_v62   ;;  %v3077_v14 = vmul.f32 %v721_v57, %v2868_v48  ;;  %v3097_v9 = vmul.f32 %v729_v13, %v2890_v28 }
 0x49d   :  { %4041 = vst [vmem:[#allocation17_spill] sm:$0xff] %v3077_v14  ;;  %v841_v20 = vmul.f32 %v3077_v14, %v3077_v14  ;;  %4044 = vst [vmem:[#allocation20_spill] sm:$0xff] %v3097_v9 }
 0x49e   :  { %v662_v7 = vpop.permute.xlu1 %661  ;;  %v737_v48 = vpop.permute.xlu0 %736 }
 0x49f   :  { %v3072_v23 = vmul.f32 %v662_v7, %v2893_v29  ;;  %907 = vperm.xlu0 %2385, %v826_v34   ;;  %946 = vperm.xlu1 %2384, %v839_v31   ;;  %v3085_v29 = vmul.f32 %v725_v37, %v2882_v21  ;;  %v3107_v34 = vmul.f32 %v733_v19, %v2899_v40 }
 0x4a0   :  { %v3117_v7 = vmul.f32 %v737_v48, %v2905_v54 }
 0x4a1   :  { %4040 = vst [vmem:[#allocation16_spill] sm:$0xff] %v3072_v23  ;;  %v827_v32 = vmul.f32 %v3072_v23, %v3072_v23 }
 0x4a2   :  { %v666_v45 = vpop.permute.xlu1 %665  ;;  %v741_v57 = vpop.permute.xlu0 %740  ;;  %4046 = vst [vmem:[#allocation22_spill] sm:$0xff] %v3117_v7 }
 0x4a3   :  { %v3082_v26 = vmul.f32 %v666_v45, %v2901_v38  ;;  %949 = vperm.xlu1 %2384, %v840_v11   ;;  %910 = vperm.xlu0 %2385, %v827_v32   ;;  %v842_v38 = vmul.f32 %v3085_v29, %v3085_v29  ;;  %v3127_v45 = vmul.f32 %v741_v57, %v2913_v8 }
 0x4a5   :  { %4042 = vst [vmem:[#allocation18_spill] sm:$0xff] %v3082_v26  ;;  %v828_v17 = vmul.f32 %v3082_v26, %v3082_v26  ;;  %4048 = vst [vmem:[#allocation24_spill] sm:$0xff] %v3127_v45 }
 0x4a6   :  { %v670_v36 = vpop.permute.xlu1 %669  ;;  %v745_v40 = vpop.permute.xlu0 %744 }
 0x4a7   :  { %v3092_v6 = vmul.f32 %v670_v36, %v2907_v44  ;;  %952 = vperm.xlu1 %2384, %v841_v20   ;;  %913 = vperm.xlu0 %2385, %v828_v17   ;;  %v843_v44 = vmul.f32 %v3097_v9, %v3097_v9  ;;  %v3137_v36 = vmul.f32 %v745_v40, %v2921_v16 }
 0x4a9   :  { %4043 = vst [vmem:[#allocation19_spill] sm:$0xff] %v3092_v6  ;;  %v829_v21 = vmul.f32 %v3092_v6, %v3092_v6  ;;  %4050 = vst [vmem:[#allocation26_spill] sm:$0xff] %v3137_v36 }
 0x4aa   :  { %v674_v37 = vpop.permute.xlu1 %673  ;;  %v749_v48 = vpop.permute.xlu0 %748 }
 0x4ab   :  { %v3102_v62 = vmul.f32 %v674_v37, %v2915_v46  ;;  %955 = vperm.xlu1 %2384, %v842_v38   ;;  %916 = vperm.xlu0 %2385, %v829_v21   ;;  %v844_v46 = vmul.f32 %v3107_v34, %v3107_v34  ;;  %v847_v38 = vmul.f32 %v3137_v36, %v3137_v36 }
 0x4ad   :  { %v830_v28 = vmul.f32 %v3102_v62, %v3102_v62 }
 0x4ae   :  { %v678_v13 = vpop.permute.xlu1 %677  ;;  %v753_v21 = vpop.permute.xlu0 %752 }
 0x4af   :  { %v3112_v31 = vmul.f32 %v678_v13, %v2923_v27  ;;  %958 = vperm.xlu1 %2384, %v843_v44   ;;  %919 = vperm.xlu0 %2385, %v830_v28   ;;  %v845_v27 = vmul.f32 %v3117_v7, %v3117_v7  ;;  %v3149_v57 = vmul.f32 %v753_v21, %v2959_v39 }
 0x4b1   :  { %4045 = vst [vmem:[#allocation21_spill] sm:$0xff] %v3112_v31  ;;  %v831_v11 = vmul.f32 %v3112_v31, %v3112_v31  ;;  %4052 = vst [vmem:[#allocation28_spill] sm:$0xff] %v3149_v57  ;;  %v849_v16 = vmul.f32 %v3149_v57, %v3149_v57 }
 0x4b2   :  { %v682_v19 = vpop.permute.xlu1 %681 }
 0x4b3   :  { %v3122_v32 = vmul.f32 %v682_v19, %v2937_v30  ;;  %961 = vperm.xlu1 %2384, %v844_v46   ;;  %922 = vperm.xlu0 %2385, %v831_v11   ;;  %v846_v30 = vmul.f32 %v3127_v45, %v3127_v45 }
 0x4b5   :  { %4047 = vst [vmem:[#allocation23_spill] sm:$0xff] %v3122_v32  ;;  %v832_v54 = vmul.f32 %v3122_v32, %v3122_v32 }
 0x4b6   :  { %v686_v20 = vpop.permute.xlu1 %685 }
 0x4b7   :  { %v3132_v17 = vmul.f32 %v686_v20, %v2961_v2  ;;  %964 = vperm.xlu1 %2384, %v845_v27   ;;  %925 = vperm.xlu0 %2385, %v832_v54   ;;  %v3144_v2 = vmul.f32 %v749_v48, %v2935_v43 }
 0x4b9   :  { %4049 = vst [vmem:[#allocation25_spill] sm:$0xff] %v3132_v17  ;;  %v833_v8 = vmul.f32 %v3132_v17, %v3132_v17  ;;  %4051 = vst [vmem:[#allocation27_spill] sm:$0xff] %v3144_v2  ;;  %v848_v37 = vmul.f32 %v3144_v2, %v3144_v2 }
 0x4bb   :  { %967 = vperm.xlu1 %2384, %v846_v30   ;;  %928 = vperm.xlu0 %2385, %v833_v8  }
 0x4bf   :  { %970 = vperm.xlu1 %2384, %v847_v38  }
 0x4c3   :  { %973 = vperm.xlu1 %2384, %v848_v37  }
 0x4c7   :  { %976 = vperm.xlu1 %2384, %v849_v16  }
 0x4f6   :  { %v887_v44 = vpop.permute.xlu0 %886  ;;  %v884_v28 = vpop.permute.xlu1 %883 }
 0x4f7   :  { %v985_v33 = vrot.slane %v887_v44, %v2757_v50  ;;  %v981_v5 = vrot.slane %v884_v28, %v2752_v47 }
 0x4f9   :  { %v986_v44 = vsel %vm244_vm2, %v985_v33, %v981_v5 }
 0x4fa   :  { %v890_v46 = vpop.permute.xlu1 %889 }
 0x4fb   :  { %v990_v6 = vrot.slane %v890_v46, %v2760_v51 }
 0x4fd   :  { %v991_v46 = vsel %vm251_vm3, %v990_v6, %v986_v44 }
 0x4fe   :  { %v893_v43 = vpop.permute.xlu1 %892 }
 0x4ff   :  { %v995_v26 = vrot.slane %v893_v43, %v2763_v52 }
 0x502   :  { %v932_v13 = vpop.permute.xlu0 %931 }
 0x503   :  { %v1060_v1 = vrot.slane %v932_v13, %v2752_v47 }
 0x506   :  { %v938_v11 = vpop.permute.xlu0 %937 }
 0x507   :  { %v1069_v32 = vrot.slane %v938_v11, %v2760_v51 }
 0x50a   :  { %v896_v40 = vpop.permute.xlu0 %895 }
 0x50e   :  { %v899_v19 = vpop.permute.xlu0 %898  ;;  %v935_v27 = vpop.permute.xlu1 %934 }
 0x50f   :  { %v1064_v9 = vrot.slane %v935_v27, %v2757_v50  ;;  %v1000_v27 = vrot.slane %v896_v40, %v2770_v55  ;;  %v1005_v28 = vrot.slane %v899_v19, %v2773_v56  ;;  %v996_v40 = vsel %vm258_vm4, %v995_v26, %v991_v46  ;;  %v4053_v26 = vld [vmem:[#allocation6_spill] sm:$0xff]  ;;  %v4055_v46 = vld [vmem:[#allocation8_spill] sm:$0xff] }
 0x511   :  { %v1065_v17 = vsel %vm244_vm2, %v1064_v9, %v1060_v1  ;;  %v1001_v33 = vsel %vm265_vm5, %v1000_v27, %v996_v40  ;;  %v4054_v27 = vld [vmem:[#allocation7_spill] sm:$0xff] }
 0x512   :  { %v902_v54 = vpop.permute.xlu0 %901  ;;  %v941_v20 = vpop.permute.xlu1 %940  ;;  %v1070_v1 = vsel %vm251_vm3, %v1069_v32, %v1065_v17  ;;  %v1006_v17 = vsel %vm272_vm6, %v1005_v28, %v1001_v33  ;;  %v4057_v33 = vld [vmem:[#allocation10_spill] sm:$0xff] }
 0x513   :  { %v1074_v23 = vrot.slane %v941_v20, %v2763_v52  ;;  %v1010_v43 = vrot.slane %v902_v54, %v2778_v59 }
 0x515   :  { %v1075_v20 = vsel %vm258_vm4, %v1074_v23, %v1070_v1 }
 0x516   :  { %v905_v48 = vpop.permute.xlu0 %904  ;;  %v944_v30 = vpop.permute.xlu1 %943 }
 0x517   :  { %v1079_v49 = vrot.slane %v944_v30, %v2770_v55  ;;  %v1015_v30 = vrot.slane %v905_v48, %v2781_v60  ;;  %v1011_v48 = vsel %vm279_vm7, %v1010_v43, %v1006_v17  ;;  %v4056_v43 = vld [vmem:[#allocation9_spill] sm:$0xff] }
 0x519   :  { %v1080_v19 = vsel %vm265_vm5, %v1079_v49, %v1075_v20 }
 0x51a   :  { %v908_v39 = vpop.permute.xlu0 %907  ;;  %v947_v8 = vpop.permute.xlu1 %946 }
 0x51b   :  { %v1084_v13 = vrot.slane %v947_v8, %v2773_v56  ;;  %v1020_v6 = vrot.slane %v908_v39, %v2784_v61  ;;  %v1016_v39 = vsel %vm286_vm8, %v1015_v30, %v1011_v48 }
 0x51d   :  { %v1085_v8 = vsel %vm272_vm6, %v1084_v13, %v1080_v19 }
 0x51e   :  { %v911_v38 = vpop.permute.xlu0 %910  ;;  %v950_v21 = vpop.permute.xlu1 %949 }
 0x51f   :  { %v1089_v9 = vrot.slane %v950_v21, %v2778_v59  ;;  %v1025_v21 = vrot.slane %v911_v38, %v4053_v26  ;;  %v1021_v38 = vsel %vm3991_vm9, %v1020_v6, %v1016_v39 }
 0x521   :  { %v1026_v40 = vsel %vm3989_vm10, %v1025_v21, %v1021_v38 }
 0x522   :  { %v914_v37 = vpop.permute.xlu0 %913  ;;  %v953_v57 = vpop.permute.xlu1 %952 }
 0x523   :  { %v1094_v5 = vrot.slane %v953_v57, %v2781_v60  ;;  %v1090_v57 = vsel %vm279_vm7, %v1089_v9, %v1085_v8  ;;  %v1030_v44 = vrot.slane %v914_v37, %v4054_v27 }
 0x525   :  { %v1031_v30 = vsel %vm3988_vm11, %v1030_v44, %v1026_v40 }
 0x526   :  { %v3153_v16 = vpop.permute.xlu0 %916  ;;  %v956_v2 = vpop.permute.xlu1 %955 }
 0x527   :  { %v1099_v54 = vrot.slane %v956_v2, %v2784_v61  ;;  %v1095_v2 = vsel %vm286_vm8, %v1094_v5, %v1090_v57  ;;  %v1035_v28 = vrot.slane %v3153_v16, %v4055_v46 }
 0x52a   :  { %v959_v36 = vpop.permute.xlu1 %958  ;;  %v3155_v45 = vpop.permute.xlu0 %919 }
 0x52b   :  { %v1104_v23 = vrot.slane %v959_v36, %v4053_v26  ;;  %v1100_v36 = vsel %vm3991_vm9, %v1099_v54, %v1095_v2  ;;  %v1040_v1 = vrot.slane %v3155_v45, %v4056_v43  ;;  %vm4064_vm9 = vcmask 1041409  }
 0x52d   :  { %v1105_v20 = vsel %vm3989_vm10, %v1104_v23, %v1100_v36  ;;  %vm4062_vm10 = vcmask 1048512  }
 0x52e   :  { %v962_v7 = vpop.permute.xlu1 %961  ;;  %v3158_v14 = vpop.permute.xlu0 %922 }
 0x52f   :  { %v1109_v49 = vrot.slane %v962_v7, %v4054_v27  ;;  %v1045_v16 = vrot.slane %v3158_v14, %v2815_v12 }
 0x531   :  { %v1110_v5 = vsel %vm3988_vm11, %v1109_v49, %v1105_v20  ;;  %vm4061_vm11 = vmmov %vm4060_vm14 }
 0x532   :  { %v965_v15 = vpop.permute.xlu1 %964  ;;  %v926_v11 = vpop.permute.xlu0 %925 }
 0x533   :  { %v1114_v13 = vrot.slane %v965_v15, %v4055_v46  ;;  %v1050_v19 = vrot.slane %v926_v11, %v4057_v33 }
 0x535   :  { %v1115_v6 = vsel %vm3990_vm12, %v1114_v13, %v1110_v5 }
 0x536   :  { %v968_v31 = vpop.permute.xlu1 %967  ;;  %v929_v9 = vpop.permute.xlu0 %928 }
 0x537   :  { %v1119_v37 = vrot.slane %v968_v31, %v4056_v43  ;;  %v1036_v31 = vsel %vm3990_vm12, %v1035_v28, %v1031_v30  ;;  %v1055_v54 = vrot.slane %v929_v9, %v2857_v42  ;;  %vm4063_vm12 = vmmov %vm4062_vm10 }
 0x538   :  { %v1041_v17 = vsel %vm321_vm13, %v1040_v1, %v1036_v31 }
 0x539   :  { %v1120_v14 = vsel %vm321_vm13, %v1119_v37, %v1115_v6 }
 0x53a   :  { %v971_v32 = vpop.permute.xlu1 %970 }
 0x53b   :  { %v1124_v15 = vrot.slane %v971_v32, %v2815_v12  ;;  %v1046_v32 = vsel %vm4058_vm0, %v1045_v16, %v1041_v17 }
 0x53c   :  { %v1051_v11 = vsel %vm4060_vm14, %v1050_v19, %v1046_v32 }
 0x53d   :  { %v1125_v21 = vsel %vm4059_vm1, %v1124_v15, %v1120_v14  ;;  %v1056_v57 = vsel %vm4062_vm10, %v1055_v54, %v1051_v11  ;;  %vm4102_vm10 = vcmask 654912  }
 0x53e   :  { %v974_v7 = vpop.permute.xlu1 %973 }
 0x53f   :  { %v1129_v45 = vrot.slane %v974_v7, %v4057_v33 }
 0x541   :  { %v1130_v48 = vsel %vm4061_vm11, %v1129_v45, %v1125_v21  ;;  %vm4103_vm11 = vcmask 720512  }
 0x542   :  { %v977_v8 = vpop.permute.xlu1 %976 }
 0x543   :  { %v1134_v23 = vrot.slane %v977_v8, %v2857_v42 }
 0x545   :  { %v1135_v44 = vsel %vm4063_vm12, %v1134_v23, %v1130_v48  ;;  %vm4104_vm12 = vcmask 786112  }
 0x546   :  { %v1136_v49 = vsel %vm4064_vm9, %v1135_v44, %v1056_v57  ;;  %vm4101_vm9 = vcmask 589312  }
 0x547   :  { %v1138_v39 = vsel %vm525_vm15, %v1136_v49, 0.0  ;;  %vm4105_vm14 = vmmov %vm4101_vm9 }
 0x548   :  { %1139 = vadd.xlane.f32.xlu0 %v1138_v39 }
 0x5d1   :  { %v1140_v2 = vpop.xlane.xlu0 %1139 }
 0x5d2   :  { %2386 = vrsqrt.f32 %v1140_v2  ;;  %vm1143_vm0 = vcmp.eq.f32.partialorder %v1140_v2, inf  ;;  %v1146_v38 = vand.u32 2147483648, %v1140_v2  ;;  %vm1145_vm1 = vcmp.eq.f32.partialorder %v1140_v2, 0.0 }
 0x5df   :  { %v2387_v28 = vpop.eup %2386 }
 0x5e0   :  { %v1142_v13 = vmul.f32 %v2387_v28, %v1140_v2 }
 0x5e2   :  { %v1144_v36 = vsel %vm1143_vm0, %v1140_v2, %v1142_v13  ;;  %vm4106_vm0 = vmmov %vm4102_vm10 }
 0x5e3   :  { %v1147_v1 = vsel %vm1145_vm1, %v1146_v38, %v1144_v36  ;;  %vm4107_vm1 = vcmask 917312  }
 0x5e4   :  { %v1152_v9 = vrot.slane %v1147_v1, %v2986_v41  ;;  %v1156_v37 = vrot.slane %v1147_v1, %v2990_v24 }
 0x5e6   :  { %2388 = vrcp.f32 %v1152_v9 }
 0x5e7   :  { %2390 = vrcp.f32 %v1156_v37 }
 0x5f3   :  { %v3228_v7 = vpop.eup %2388 }
 0x5f4   :  { %v3230_v40 = vpop.eup %2390  ;;  %v1167_v20 = vmul.f32 %v3228_v7, %v3045_v63  ;;  %v1160_v16 = vmul.f32 %v3228_v7, %v2997_v53  ;;  %v1161_v15 = vmul.f32 %v3228_v7, %v2994_v25  ;;  %v1162_v31 = vmul.f32 %v3228_v7, %v3004_v22 }
 0x5f5   :  { %v1179_v30 = vmul.f32 %v3230_v40, %v3019_v58  ;;  %v1181_v45 = vmul.f32 %v3230_v40, %v3050_v18  ;;  %v1183_v25 = vmul.f32 %v3230_v40, %v3067_v35  ;;  %v1163_v58 = vmul.f32 %v3228_v7, %v3009_v4 }
 0x5f6   :  { %v1200_v5 = vmul.f32 5.656854, %v1167_v20  ;;  %v1193_v19 = vmul.f32 5.656854, %v1160_v16  ;;  %v1194_v53 = vmul.f32 5.656854, %v1161_v15  ;;  %v1185_v32 = vmul.f32 %v3230_v40, %v3085_v29 }
 0x5f7   :  { %v1211_v54 = vmul.f32 5.656854, %v1179_v30  ;;  %v1213_v22 = vmul.f32 5.656854, %v1181_v45  ;;  %v1195_v14 = vmul.f32 5.656854, %v1162_v31  ;;  %v1164_v4 = vmul.f32 %v3228_v7, %v3022_v10 }
 0x5f8   :  { %v3244_v6 = vadd.f32 1.0, %v1200_v5  ;;  %v3246_v63 = vadd.f32 1.0, %v1193_v19  ;;  %v3256_v17 = vadd.f32 1.0, %v1194_v53  ;;  %v1215_v8 = vmul.f32 5.656854, %v1183_v25  ;;  %v4068_v16 = vld [vmem:[#allocation23_spill] sm:$0xff] }
 0x5f9   :  { %v3254_v18 = vadd.f32 1.0, %v1211_v54  ;;  %v3262_v21 = vadd.f32 1.0, %v1213_v22  ;;  %v3264_v35 = vadd.f32 1.0, %v1195_v14  ;;  %v1196_v23 = vmul.f32 5.656854, %v1163_v58  ;;  %v4070_v45 = vld [vmem:[#allocation16_spill] sm:$0xff] }
 0x5fa   :  { %4065 = vst [vmem:[#allocation6_spill] sm:$0xff] %v3244_v6  ;;  %1311 = vperm.xlu0 %2385, %v3244_v6   ;;  %1290 = vperm.xlu1 %2384, %v3246_v63   ;;  %v3270_v11 = vadd.f32 1.0, %v1215_v8  ;;  %v1217_v48 = vmul.f32 5.656854, %v1185_v32  ;;  %v1197_v44 = vmul.f32 5.656854, %v1164_v4  ;;  %v1187_v29 = vmul.f32 %v3230_v40, %v3107_v34 }
 0x5fb   :  { %v3272_v57 = vadd.f32 1.0, %v1196_v23  ;;  %v1165_v49 = vmul.f32 %v3228_v7, %v3027_v3  ;;  %v1172_v10 = vmul.f32 %v3228_v7, %v3102_v62  ;;  %v1166_v39 = vmul.f32 %v3228_v7, %v3037_v0  ;;  %v4066_v34 = vld [vmem:[#allocation21_spill] sm:$0xff]  ;;  %v4067_v0 = vld [vmem:[#allocation14_spill] sm:$0xff]  ;;  %v4074_v23 = vld [vmem:[#allocation19_spill] sm:$0xff] }
 0x5fc   :  { %v3284_v2 = vadd.f32 1.0, %v1217_v48  ;;  %v3286_v28 = vadd.f32 1.0, %v1197_v44  ;;  %v1219_v13 = vmul.f32 5.656854, %v1187_v29  ;;  %v1173_v36 = vmul.f32 %v3228_v7, %v4066_v34  ;;  %v4072_v22 = vld [vmem:[#allocation25_spill] sm:$0xff]  ;;  %v4073_v8 = vld [vmem:[#allocation18_spill] sm:$0xff] }
 0x5fd   :  { %v1198_v38 = vmul.f32 5.656854, %v1165_v49  ;;  %v1205_v3 = vmul.f32 5.656854, %v1172_v10  ;;  %v1199_v9 = vmul.f32 5.656854, %v1166_v39  ;;  %v1168_v37 = vmul.f32 %v3228_v7, %v4067_v0 }
 0x5fe   :  { %1344 = vperm.xlu0 %2385, %v3254_v18   ;;  %1293 = vperm.xlu1 %2384, %v3256_v17   ;;  %v3292_v1 = vadd.f32 1.0, %v1219_v13  ;;  %v1206_v20 = vmul.f32 5.656854, %v1173_v36  ;;  %v1174_v15 = vmul.f32 %v3228_v7, %v4068_v16  ;;  %v1169_v31 = vmul.f32 %v3228_v7, %v4070_v45  ;;  %v4081_v36 = vld [vmem:[#allocation12_spill] sm:$0xff]  ;;  %v4084_v45 = vld [vmem:[#allocation15_spill] sm:$0xff] }
 0x5ff   :  { %v3294_v62 = vadd.f32 1.0, %v1198_v38  ;;  %v3302_v30 = vadd.f32 1.0, %v1205_v3  ;;  %v3304_v5 = vadd.f32 1.0, %v1199_v9  ;;  %v1201_v19 = vmul.f32 5.656854, %v1168_v37  ;;  %v4079_v38 = vld [vmem:[#allocation11_spill] sm:$0xff] }
 0x600   :  { %v3310_v54 = vadd.f32 1.0, %v1206_v20  ;;  %v1207_v53 = vmul.f32 5.656854, %v1174_v15  ;;  %v1202_v58 = vmul.f32 5.656854, %v1169_v31  ;;  %v1175_v14 = vmul.f32 %v3228_v7, %v4072_v22  ;;  %v4082_v20 = vld [vmem:[#allocation13_spill] sm:$0xff] }
 0x601   :  { %4069 = vst [vmem:[#allocation7_spill] sm:$0xff] %v3302_v30  ;;  %v3312_v25 = vadd.f32 1.0, %v1201_v19  ;;  %v1170_v32 = vmul.f32 %v3228_v7, %v4073_v8  ;;  %v1171_v4 = vmul.f32 %v3228_v7, %v4074_v23  ;;  %v1177_v3 = vmul.f32 %v3230_v40, %v4079_v38  ;;  %v4086_v22 = vld [vmem:[#allocation17_spill] sm:$0xff]  ;;  %v4088_v23 = vld [vmem:[#allocation20_spill] sm:$0xff] }
 0x602   :  { %1350 = vperm.xlu0 %2385, %v3262_v21   ;;  %1296 = vperm.xlu1 %2384, %v3264_v35   ;;  %4071 = vst [vmem:[#allocation8_spill] sm:$0xff] %v3310_v54  ;;  %v3322_v48 = vadd.f32 1.0, %v1207_v53  ;;  %v3324_v44 = vadd.f32 1.0, %v1202_v58  ;;  %v1208_v29 = vmul.f32 5.656854, %v1175_v14  ;;  %v1178_v9 = vmul.f32 %v3230_v40, %v4081_v36  ;;  %v4092_v36 = vld [vmem:[#allocation24_spill] sm:$0xff] }
 0x603   :  { %v1203_v49 = vmul.f32 5.656854, %v1170_v32  ;;  %v1204_v13 = vmul.f32 5.656854, %v1171_v4  ;;  %v1209_v34 = vmul.f32 5.656854, %v1177_v3  ;;  %v1180_v16 = vmul.f32 %v3230_v40, %v4082_v20 }
 0x604   :  { %4075 = vst [vmem:[#allocation9_spill] sm:$0xff] %v3322_v48  ;;  %4076 = vst [vmem:[#allocation10_spill] sm:$0xff] %v3324_v44  ;;  %v3328_v10 = vadd.f32 1.0, %v1208_v29  ;;  %v1210_v37 = vmul.f32 5.656854, %v1178_v9  ;;  %v1182_v31 = vmul.f32 %v3230_v40, %v4084_v45  ;;  %v1184_v14 = vmul.f32 %v3230_v40, %v4086_v22 }
 0x605   :  { %v3330_v39 = vadd.f32 1.0, %v1203_v49  ;;  %v3336_v7 = vadd.f32 1.0, %v1204_v13  ;;  %v3341_v0 = vadd.f32 1.0, %v1209_v34  ;;  %v1212_v19 = vmul.f32 5.656854, %v1180_v16  ;;  %v4090_v13 = vld [vmem:[#allocation22_spill] sm:$0xff] }
 0x606   :  { %1356 = vperm.xlu0 %2385, %v3270_v11   ;;  %1299 = vperm.xlu1 %2384, %v3272_v57   ;;  %4077 = vst [vmem:[#allocation21_spill] sm:$0xff] %v3328_v10  ;;  %v3346_v15 = vadd.f32 1.0, %v1210_v37  ;;  %v1214_v58 = vmul.f32 5.656854, %v1182_v31  ;;  %v1216_v32 = vmul.f32 5.656854, %v1184_v14  ;;  %v1186_v4 = vmul.f32 %v3230_v40, %v4088_v23 }
 0x607   :  { %4078 = vst [vmem:[#allocation14_spill] sm:$0xff] %v3330_v39  ;;  %4080 = vst [vmem:[#allocation23_spill] sm:$0xff] %v3336_v7  ;;  %v3351_v53 = vadd.f32 1.0, %v1212_v19  ;;  %v1188_v38 = vmul.f32 %v3230_v40, %v4090_v13  ;;  %v1189_v9 = vmul.f32 %v3230_v40, %v4092_v36  ;;  %v4094_v16 = vld [vmem:[#allocation26_spill] sm:$0xff]  ;;  %v4098_v23 = vld [vmem:[#allocation28_spill] sm:$0xff] }
 0x608   :  { %4083 = vst [vmem:[#allocation16_spill] sm:$0xff] %v3346_v15  ;;  %v3356_v8 = vadd.f32 1.0, %v1214_v58  ;;  %v3361_v29 = vadd.f32 1.0, %v1216_v32  ;;  %v1218_v49 = vmul.f32 5.656854, %v1186_v4  ;;  %v1190_v19 = vmul.f32 %v3230_v40, %v4094_v16  ;;  %v4096_v58 = vld [vmem:[#allocation27_spill] sm:$0xff] }
 0x609   :  { %4085 = vst [vmem:[#allocation25_spill] sm:$0xff] %v3351_v53  ;;  %v1220_v34 = vmul.f32 5.656854, %v1188_v38  ;;  %v1221_v20 = vmul.f32 5.656854, %v1189_v9  ;;  %v1191_v22 = vmul.f32 %v3230_v40, %v4096_v58  ;;  %v1192_v4 = vmul.f32 %v3230_v40, %v4098_v23 }
 0x60a   :  { %1362 = vperm.xlu0 %2385, %v3284_v2   ;;  %1302 = vperm.xlu1 %2384, %v3286_v28   ;;  %4087 = vst [vmem:[#allocation18_spill] sm:$0xff] %v3356_v8  ;;  %4089 = vst [vmem:[#allocation19_spill] sm:$0xff] %v3361_v29  ;;  %v3366_v3 = vadd.f32 1.0, %v1218_v49  ;;  %v1222_v31 = vmul.f32 5.656854, %v1190_v19 }
 0x60b   :  { %v3371_v37 = vadd.f32 1.0, %v1220_v34  ;;  %v3376_v45 = vadd.f32 1.0, %v1221_v20  ;;  %v1223_v32 = vmul.f32 5.656854, %v1191_v22  ;;  %v1224_v13 = vmul.f32 5.656854, %v1192_v4 }
 0x60c   :  { %4091 = vst [vmem:[#allocation11_spill] sm:$0xff] %v3366_v3  ;;  %v3381_v14 = vadd.f32 1.0, %v1222_v31 }
 0x60d   :  { %4093 = vst [vmem:[#allocation12_spill] sm:$0xff] %v3371_v37  ;;  %4095 = vst [vmem:[#allocation13_spill] sm:$0xff] %v3376_v45  ;;  %v3386_v49 = vadd.f32 1.0, %v1223_v32  ;;  %v3389_v38 = vadd.f32 1.0, %v1224_v13 }
 0x60e   :  { %1368 = vperm.xlu0 %2385, %v3292_v1   ;;  %1305 = vperm.xlu1 %2384, %v3294_v62   ;;  %4097 = vst [vmem:[#allocation15_spill] sm:$0xff] %v3381_v14 }
 0x60f   :  { %4099 = vst [vmem:[#allocation17_spill] sm:$0xff] %v3386_v49  ;;  %4100 = vst [vmem:[#allocation20_spill] sm:$0xff] %v3389_v38 }
 0x612   :  { %1326 = vperm.xlu0 %2385, %v3302_v30   ;;  %1308 = vperm.xlu1 %2384, %v3304_v5  }
 0x616   :  { %1329 = vperm.xlu0 %2385, %v3310_v54   ;;  %1314 = vperm.xlu1 %2384, %v3312_v25  }
 0x61a   :  { %1332 = vperm.xlu0 %2385, %v3322_v48   ;;  %1317 = vperm.xlu1 %2384, %v3324_v44  }
 0x61e   :  { %1335 = vperm.xlu0 %2385, %v3328_v10   ;;  %1320 = vperm.xlu1 %2384, %v3330_v39  }
 0x622   :  { %1323 = vperm.xlu1 %2384, %v3336_v7  }
 0x626   :  { %1338 = vperm.xlu1 %2384, %v3341_v0  }
 0x62a   :  { %1341 = vperm.xlu1 %2384, %v3346_v15  }
 0x62e   :  { %1347 = vperm.xlu1 %2384, %v3351_v53  }
 0x632   :  { %1353 = vperm.xlu1 %2384, %v3356_v8  }
 0x636   :  { %1359 = vperm.xlu1 %2384, %v3361_v29  }
 0x63a   :  { %1365 = vperm.xlu1 %2384, %v3366_v3  }
 0x63e   :  { %1371 = vperm.xlu1 %2384, %v3371_v37  }
 0x642   :  { %1374 = vperm.xlu1 %2384, %v3376_v45  }
 0x646   :  { %1377 = vperm.xlu1 %2384, %v3381_v14  }
 0x64a   :  { %1380 = vperm.xlu1 %2384, %v3386_v49  }
 0x64e   :  { %1383 = vperm.xlu1 %2384, %v3389_v38  }
 0x675   :  { %v1291_v34 = vpop.permute.xlu1 %1290  ;;  %v1312_v58 = vpop.permute.xlu0 %1311 }
 0x676   :  { %v1388_v7 = vrot.slane %v1291_v34, %v2752_v47 }
 0x679   :  { %v1294_v36 = vpop.permute.xlu1 %1293  ;;  %v1345_v23 = vpop.permute.xlu0 %1344 }
 0x67a   :  { %v1392_v53 = vrot.slane %v1294_v36, %v2757_v50 }
 0x67c   :  { %v1393_v48 = vsel %vm244_vm2, %v1392_v53, %v1388_v7 }
 0x67d   :  { %v1297_v9 = vpop.permute.xlu1 %1296  ;;  %v1351_v14 = vpop.permute.xlu0 %1350 }
 0x67e   :  { %v1397_v54 = vrot.slane %v1297_v9, %v2760_v51 }
 0x680   :  { %v1398_v9 = vsel %vm251_vm3, %v1397_v54, %v1393_v48 }
 0x681   :  { %v1300_v20 = vpop.permute.xlu1 %1299  ;;  %v1357_v49 = vpop.permute.xlu0 %1356 }
 0x682   :  { %v1402_v39 = vrot.slane %v1300_v20, %v2763_v52 }
 0x685   :  { %v1303_v16 = vpop.permute.xlu1 %1302  ;;  %v1363_v3 = vpop.permute.xlu0 %1362 }
 0x686   :  { %v1407_v44 = vrot.slane %v1303_v16, %v2770_v55 }
 0x689   :  { %v1306_v19 = vpop.permute.xlu1 %1305  ;;  %v3392_v8 = vpop.permute.xlu0 %1368 }
 0x68a   :  { %v1412_v6 = vrot.slane %v1306_v19, %v2773_v56 }
 0x68d   :  { %v1309_v31 = vpop.permute.xlu1 %1308 }
 0x68e   :  { %v1417_v34 = vrot.slane %v1309_v31, %v2778_v59  ;;  %v1422_v31 = vrot.slane %v1312_v58, %v2781_v60 }
 0x691   :  { %v1315_v40 = vpop.permute.xlu1 %1314 }
 0x692   :  { %v1427_v48 = vrot.slane %v1315_v40, %v2784_v61  ;;  %v1496_v40 = vrot.slane %v1357_v49, %v2778_v59 }
 0x695   :  { %v1318_v22 = vpop.permute.xlu1 %1317 }
 0x699   :  { %v1321_v32 = vpop.permute.xlu1 %1320 }
 0x69d   :  { %v1324_v4 = vpop.permute.xlu1 %1323 }
 0x6a1   :  { %v1339_v37 = vpop.permute.xlu1 %1338 }
 0x6a2   :  { %v1467_v10 = vrot.slane %v1339_v37, %v2752_v47  ;;  %v1403_v37 = vsel %vm258_vm4, %v1402_v39, %v1398_v9  ;;  %v1432_v39 = vrot.slane %v1318_v22, %v4053_v26 }
 0x6a3   :  { %v1408_v16 = vsel %vm265_vm5, %v1407_v44, %v1403_v37 }
 0x6a4   :  { %v1413_v53 = vsel %vm272_vm6, %v1412_v6, %v1408_v16  ;;  %v1506_v16 = vrot.slane %v1363_v3, %v2784_v61 }
 0x6a5   :  { %v1342_v13 = vpop.permute.xlu1 %1341  ;;  %v1418_v54 = vsel %vm279_vm7, %v1417_v34, %v1413_v53 }
 0x6a6   :  { %v1471_v15 = vrot.slane %v1342_v13, %v2757_v50  ;;  %v1476_v13 = vrot.slane %v1345_v23, %v2760_v51  ;;  %v1327_v50 = vpop.permute.xlu0 %1326  ;;  %v1423_v23 = vsel %vm286_vm8, %v1422_v31, %v1418_v54 }
 0x6a8   :  { %v1472_v45 = vsel %vm244_vm2, %v1471_v15, %v1467_v10 }
 0x6a9   :  { %v1348_v29 = vpop.permute.xlu1 %1347  ;;  %v1477_v7 = vsel %vm251_vm3, %v1476_v13, %v1472_v45  ;;  %v1437_v45 = vrot.slane %v1321_v32, %v4054_v27  ;;  %v1428_v13 = vsel %vm4101_vm9, %v1427_v48, %v1423_v23  ;;  %v1516_v48 = vrot.slane %v3392_v8, %v4054_v27  ;;  %vm4108_vm9 = vmmov %vm4103_vm11 }
 0x6aa   :  { %v1481_v36 = vrot.slane %v1348_v29, %v2763_v52  ;;  %v1486_v29 = vrot.slane %v1351_v14, %v2770_v55  ;;  %v1330_v44 = vpop.permute.xlu0 %1329  ;;  %v1433_v22 = vsel %vm4102_vm10, %v1432_v39, %v1428_v13  ;;  %vm4109_vm10 = vmmov %vm4104_vm12 }
 0x6ab   :  { %v1438_v9 = vsel %vm4103_vm11, %v1437_v45, %v1433_v22  ;;  %vm4110_vm11 = vcmask 982912  }
 0x6ac   :  { %v1482_v10 = vsel %vm258_vm4, %v1481_v36, %v1477_v7 }
 0x6ad   :  { %v1354_v38 = vpop.permute.xlu1 %1353  ;;  %v1487_v6 = vsel %vm265_vm5, %v1486_v29, %v1482_v10 }
 0x6ae   :  { %v1491_v15 = vrot.slane %v1354_v38, %v2773_v56  ;;  %v1442_v38 = vrot.slane %v1324_v4, %v4055_v46  ;;  %v1333_v49 = vpop.permute.xlu0 %1332 }
 0x6af   :  { %v1457_v39 = vrot.slane %v1333_v49, %v4057_v33 }
 0x6b0   :  { %v1492_v14 = vsel %vm272_vm6, %v1491_v15, %v1487_v6  ;;  %v1443_v34 = vsel %vm4104_vm12, %v1442_v38, %v1438_v9  ;;  %v1452_v15 = vrot.slane %v1330_v44, %v2815_v12  ;;  %vm4111_vm12 = vmmov %vm4107_vm1 }
 0x6b1   :  { %v1360_v30 = vpop.permute.xlu1 %1359  ;;  %v1497_v32 = vsel %vm279_vm7, %v1496_v40, %v1492_v14 }
 0x6b2   :  { %v1501_v36 = vrot.slane %v1360_v30, %v2781_v60  ;;  %v1447_v30 = vrot.slane %v1327_v50, %v4056_v43  ;;  %v1336_v45 = vpop.permute.xlu0 %1335 }
 0x6b3   :  { %v1462_v14 = vrot.slane %v1336_v45, %v2857_v42 }
 0x6b4   :  { %v1502_v37 = vsel %vm286_vm8, %v1501_v36, %v1497_v32  ;;  %v1448_v53 = vsel %vm321_vm13, %v1447_v30, %v1443_v34 }
 0x6b5   :  { %v1366_v20 = vpop.permute.xlu1 %1365  ;;  %v1507_v10 = vsel %vm4105_vm14, %v1506_v16, %v1502_v37  ;;  %v1453_v31 = vsel %vm4107_vm1, %v1452_v15, %v1448_v53  ;;  %vm4112_vm14 = vmmov %vm4110_vm11 }
 0x6b6   :  { %v1511_v4 = vrot.slane %v1366_v20, %v4053_v26  ;;  %v1458_v8 = vsel %vm4110_vm11, %v1457_v39, %v1453_v31 }
 0x6b8   :  { %v1512_v29 = vsel %vm4106_vm0, %v1511_v4, %v1507_v10  ;;  %vm4113_vm0 = vcmask 1048512  }
 0x6b9   :  { %v1372_v19 = vpop.permute.xlu1 %1371  ;;  %v1517_v6 = vsel %vm4108_vm9, %v1516_v48, %v1512_v29  ;;  %vm4114_vm1 = vmmov %vm4113_vm0  ;;  %vm4115_vm9 = vcmask 1041409  }
 0x6ba   :  { %v1521_v54 = vrot.slane %v1372_v19, %v4055_v46 }
 0x6bc   :  { %v1522_v23 = vsel %vm4109_vm10, %v1521_v54, %v1517_v6 }
 0x6bd   :  { %v1375_v58 = vpop.permute.xlu1 %1374 }
 0x6be   :  { %v1526_v20 = vrot.slane %v1375_v58, %v4056_v43  ;;  %v1463_v58 = vsel %vm4113_vm0, %v1462_v14, %v1458_v8  ;;  %v4117_v14 = vld [vmem:[#allocation6_spill] sm:$0xff] }
 0x6c0   :  { %v1527_v19 = vsel %vm321_vm13, %v1526_v20, %v1522_v23 }
 0x6c1   :  { %v1378_v7 = vpop.permute.xlu1 %1377 }
 0x6c2   :  { %v1531_v50 = vrot.slane %v1378_v7, %v2815_v12 }
 0x6c4   :  { %v1532_v36 = vsel %vm4111_vm12, %v1531_v50, %v1527_v19  ;;  %v4116_v19 = vld [vmem:[#allocation13_spill] sm:$0xff] }
 0x6c5   :  { %v1381_v3 = vpop.permute.xlu1 %1380 }
 0x6c6   :  { %v1536_v44 = vrot.slane %v1381_v3, %v4057_v33 }
 0x6c8   :  { %v1537_v13 = vsel %vm4112_vm14, %v1536_v44, %v1532_v36 }
 0x6c9   :  { %v1384_v38 = vpop.permute.xlu1 %1383 }
 0x6ca   :  { %v1541_v40 = vrot.slane %v1384_v38, %v2857_v42 }
 0x6cc   :  { %v1542_v22 = vsel %vm4114_vm1, %v1541_v40, %v1537_v13  ;;  %v4118_v13 = vld [vmem:[#allocation9_spill] sm:$0xff] }
 0x6cd   :  { %v1543_v9 = vsel %vm4115_vm9, %v1542_v22, %v1463_v58  ;;  %vm4164_vm9 = vmmov %vm4114_vm1 }
 0x6ce   :  { %v1545_v32 = vsel %vm525_vm15, %v1543_v9, -inf }
 0x6cf   :  { %1546 = vmax.xlane.f32.xlu0 %v1545_v32  ;;  %v4119_v32 = vld [vmem:[#allocation10_spill] sm:$0xff] }
 0x758   :  { %v1547_v34 = vpop.xlane.xlu0 %1546 }
 0x759   :  { %v3460_v37 = vrot.slane %v1547_v34, %v2986_v41  ;;  %v3463_v4 = vrot.slane %v1547_v34, %v2990_v24 }
 0x75b   :  { %v1567_v16 = vsub.f32 %v3312_v25, %v3460_v37  ;;  %v1559_v30 = vsub.f32 %v3246_v63, %v3460_v37  ;;  %v1575_v49 = vsub.f32 %v3341_v0, %v3463_v4  ;;  %v1560_v7 = vsub.f32 %v3256_v17, %v3460_v37 }
 0x75c   :  { %v1577_v29 = vsub.f32 %v3254_v18, %v3463_v4  ;;  %v1561_v25 = vsub.f32 %v3264_v35, %v3460_v37  ;;  %v1579_v0 = vsub.f32 %v3262_v21, %v3463_v4  ;;  %v1562_v17 = vsub.f32 %v3272_v57, %v3460_v37 }
 0x75d   :  { %v1607_v53 = vmul.f32 1.442695, %v1567_v16  ;;  %v1591_v10 = vmul.f32 1.442695, %v1559_v30  ;;  %v1623_v15 = vmul.f32 1.442695, %v1575_v49  ;;  %v1581_v18 = vsub.f32 %v3270_v11, %v3463_v4 }
 0x75e   :  { %v1593_v54 = vmul.f32 1.442695, %v1560_v7  ;;  %v1627_v63 = vmul.f32 1.442695, %v1577_v29  ;;  %v1595_v48 = vmul.f32 1.442695, %v1561_v25  ;;  %v1563_v35 = vsub.f32 %v3286_v28, %v3460_v37 }
 0x75f   :  { %2392 = vpow2.f32 %v1607_v53  ;;  %v1631_v20 = vmul.f32 1.442695, %v1579_v0  ;;  %v1597_v3 = vmul.f32 1.442695, %v1562_v17  ;;  %v1635_v50 = vmul.f32 1.442695, %v1581_v18 }
 0x760   :  { %2394 = vpow2.f32 %v1591_v10  ;;  %v1583_v21 = vsub.f32 %v3284_v2, %v3463_v4  ;;  %v1599_v39 = vmul.f32 1.442695, %v1563_v35  ;;  %v1564_v57 = vsub.f32 %v3294_v62, %v3460_v37  ;;  %v4120_v49 = vld [vmem:[#allocation21_spill] sm:$0xff]  ;;  %v4123_v35 = vld [vmem:[#allocation7_spill] sm:$0xff] }
 0x761   :  { %2396 = vpow2.f32 %v1623_v15  ;;  %v1585_v28 = vsub.f32 %v3292_v1, %v3463_v4  ;;  %v1565_v44 = vsub.f32 %v3304_v5, %v3460_v37  ;;  %v1587_v38 = vsub.f32 %v4116_v19, %v3463_v4  ;;  %v4121_v15 = vld [vmem:[#allocation14_spill] sm:$0xff]  ;;  %v4127_v19 = vld [vmem:[#allocation16_spill] sm:$0xff] }
 0x762   :  { %2398 = vpow2.f32 %v1593_v54  ;;  %v1639_v11 = vmul.f32 1.442695, %v1583_v21  ;;  %v1601_v2 = vmul.f32 1.442695, %v1564_v57  ;;  %v1566_v36 = vsub.f32 %v4117_v14, %v3460_v37 }
 0x763   :  { %2400 = vpow2.f32 %v1627_v63  ;;  %v1643_v62 = vmul.f32 1.442695, %v1585_v28  ;;  %v1603_v1 = vmul.f32 1.442695, %v1565_v44  ;;  %v1647_v5 = vmul.f32 1.442695, %v1587_v38 }
 0x764   :  { %2402 = vpow2.f32 %v1595_v48  ;;  %v1573_v58 = vsub.f32 %v4118_v13, %v3460_v37  ;;  %v1605_v9 = vmul.f32 1.442695, %v1566_v36  ;;  %v1568_v34 = vsub.f32 %v4119_v32, %v3460_v37  ;;  %v4122_v48 = vld [vmem:[#allocation23_spill] sm:$0xff]  ;;  %v4130_v36 = vld [vmem:[#allocation25_spill] sm:$0xff] }
 0x765   :  { %2404 = vpow2.f32 %v1631_v20  ;;  %v1574_v7 = vsub.f32 %v4120_v49, %v3460_v37  ;;  %v1569_v29 = vsub.f32 %v4121_v15, %v3460_v37  ;;  %v1570_v17 = vsub.f32 %v4122_v48, %v3460_v37  ;;  %v4134_v49 = vld [vmem:[#allocation19_spill] sm:$0xff] }
 0x766   :  { %2406 = vpow2.f32 %v1597_v3  ;;  %v1619_v30 = vmul.f32 1.442695, %v1573_v58  ;;  %v1609_v10 = vmul.f32 1.442695, %v1568_v34  ;;  %v1576_v38 = vsub.f32 %v4127_v19, %v3463_v4  ;;  %v4142_v19 = vld [vmem:[#allocation17_spill] sm:$0xff] }
 0x767   :  { %2408 = vpow2.f32 %v1635_v50  ;;  %v1621_v25 = vmul.f32 1.442695, %v1574_v7  ;;  %v1611_v0 = vmul.f32 1.442695, %v1569_v29  ;;  %v1613_v3 = vmul.f32 1.442695, %v1570_v17 }
 0x768   :  { %2410 = vpow2.f32 %v1599_v39  ;;  %v1571_v50 = vsub.f32 %v4123_v35, %v3460_v37  ;;  %v1625_v14 = vmul.f32 1.442695, %v1576_v38  ;;  %v1582_v7 = vsub.f32 %v4134_v49, %v3463_v4  ;;  %v4136_v29 = vld [vmem:[#allocation11_spill] sm:$0xff]  ;;  %v4138_v17 = vld [vmem:[#allocation12_spill] sm:$0xff] }
 0x769   :  { %2412 = vpow2.f32 %v1639_v11  ;;  %v4125_v11 = vld [vmem:[#allocation8_spill] sm:$0xff]  ;;  %v1589_v38 = vsub.f32 %v4142_v19, %v3463_v4 }
 0x76a   :  { %2414 = vpow2.f32 %v1601_v2  ;;  %v1615_v57 = vmul.f32 1.442695, %v1571_v50  ;;  %v1572_v28 = vsub.f32 %v4125_v11, %v3460_v37  ;;  %v1637_v15 = vmul.f32 1.442695, %v1582_v7 }
 0x76b   :  { %2416 = vpow2.f32 %v1643_v62 }
 0x76c   :  { %v3487_v31 = vpop.eup %2392  ;;  %2418 = vpow2.f32 %v1603_v1  ;;  %v1617_v62 = vmul.f32 1.442695, %v1572_v28 }
 0x76d   :  { %v3491_v45 = vpop.eup %2394  ;;  %1712 = vperm.xlu0 %2385, %v3487_v31   ;;  %2420 = vpow2.f32 %v1647_v5  ;;  %v1578_v5 = vsub.f32 %v4130_v36, %v3463_v4  ;;  %v1651_v36 = vmul.f32 1.442695, %v1589_v38 }
 0x76e   :  { %1688 = vperm.xlu1 %2384, %v3491_v45   ;;  %v3497_v6 = vpop.eup %2396  ;;  %2422 = vpow2.f32 %v1605_v9  ;;  %v4132_v9 = vld [vmem:[#allocation18_spill] sm:$0xff] }
 0x76f   :  { %v3501_v23 = vpop.eup %2398  ;;  %2424 = vpow2.f32 %v1619_v30  ;;  %v1629_v58 = vmul.f32 1.442695, %v1578_v5  ;;  %v1580_v32 = vsub.f32 %v4132_v9, %v3463_v4  ;;  %v4144_v5 = vld [vmem:[#allocation20_spill] sm:$0xff] }
 0x770   :  { %v3507_v8 = vpop.eup %2400  ;;  %2426 = vpow2.f32 %v1609_v10 }
 0x771   :  { %1736 = vperm.xlu0 %2385, %v3497_v6   ;;  %v3511_v40 = vpop.eup %2402  ;;  %2428 = vpow2.f32 %v1621_v25  ;;  %v1633_v30 = vmul.f32 1.442695, %v1580_v32  ;;  %v1584_v25 = vsub.f32 %v4136_v29, %v3463_v4 }
 0x772   :  { %1691 = vperm.xlu1 %2384, %v3501_v23   ;;  %v3517_v22 = vpop.eup %2404  ;;  %2430 = vpow2.f32 %v1611_v0 }
 0x773   :  { %v3521_v16 = vpop.eup %2406  ;;  %2432 = vpow2.f32 %v1613_v3  ;;  %v1641_v48 = vmul.f32 1.442695, %v1584_v25  ;;  %v1586_v3 = vsub.f32 %v4138_v17, %v3463_v4  ;;  %v4151_v17 = vld [vmem:[#allocation5_spill] sm:$0xff] }
 0x774   :  { %v3527_v53 = vpop.eup %2408  ;;  %2434 = vpow2.f32 %v1615_v57  ;;  %v4140_v57 = vld [vmem:[#allocation15_spill] sm:$0xff] }
 0x775   :  { %1742 = vperm.xlu0 %2385, %v3507_v8   ;;  %v3531_v54 = vpop.eup %2410  ;;  %2436 = vpow2.f32 %v1617_v62  ;;  %v1645_v50 = vmul.f32 1.442695, %v1586_v3  ;;  %v1588_v11 = vsub.f32 %v4140_v57, %v3463_v4 }
 0x776   :  { %1694 = vperm.xlu1 %2384, %v3511_v40   ;;  %v3535_v63 = vpop.eup %2412  ;;  %2438 = vpow2.f32 %v1625_v14 }
 0x777   :  { %v3539_v20 = vpop.eup %2414  ;;  %2440 = vpow2.f32 %v1629_v58  ;;  %v1649_v62 = vmul.f32 1.442695, %v1588_v11  ;;  %v1590_v58 = vsub.f32 %v4144_v5, %v3463_v4 }
 0x778   :  { %v3543_v18 = vpop.eup %2416  ;;  %2442 = vpow2.f32 %v1633_v30 }
 0x779   :  { %1748 = vperm.xlu0 %2385, %v3517_v22   ;;  %v3547_v21 = vpop.eup %2418  ;;  %2444 = vpow2.f32 %v1637_v15  ;;  %v1653_v32 = vmul.f32 1.442695, %v1590_v58 }
 0x77a   :  { %1697 = vperm.xlu1 %2384, %v3521_v16   ;;  %v3551_v39 = vpop.eup %2420  ;;  %2446 = vpow2.f32 %v1641_v48 }
 0x77b   :  { %4124 = vst [vmem:[#allocation22_spill] sm:$0xff] %v3551_v39  ;;  %v3555_v2 = vpop.eup %2422  ;;  %2448 = vpow2.f32 %v1645_v50 }
 0x77c   :  { %4126 = vst [vmem:[#allocation24_spill] sm:$0xff] %v3555_v2  ;;  %v3559_v44 = vpop.eup %2424  ;;  %2450 = vpow2.f32 %v1649_v62 }
 0x77d   :  { %1754 = vperm.xlu0 %2385, %v3527_v53   ;;  %v3563_v1 = vpop.eup %2426  ;;  %2452 = vpow2.f32 %v1651_v36 }
 0x77e   :  { %1700 = vperm.xlu1 %2384, %v3531_v54   ;;  %4128 = vst [vmem:[#allocation26_spill] sm:$0xff] %v3563_v1  ;;  %v3567_v37 = vpop.eup %2428  ;;  %2454 = vpow2.f32 %v1653_v32 }
 0x77f   :  { %4129 = vst [vmem:[#allocation27_spill] sm:$0xff] %v3567_v37  ;;  %v3571_v13 = vpop.eup %2430 }
 0x780   :  { %4131 = vst [vmem:[#allocation28_spill] sm:$0xff] %v3571_v13  ;;  %v3577_v34 = vpop.eup %2432 }
 0x781   :  { %1760 = vperm.xlu0 %2385, %v3535_v63   ;;  %4133 = vst [vmem:[#allocation13_spill] sm:$0xff] %v3577_v34  ;;  %v3582_v10 = vpop.eup %2434 }
 0x782   :  { %1703 = vperm.xlu1 %2384, %v3539_v20   ;;  %4135 = vst [vmem:[#allocation6_spill] sm:$0xff] %v3582_v10  ;;  %v3587_v0 = vpop.eup %2436 }
 0x783   :  { %4137 = vst [vmem:[#allocation9_spill] sm:$0xff] %v3587_v0  ;;  %v3592_v35 = vpop.eup %2438 }
 0x784   :  { %4139 = vst [vmem:[#allocation10_spill] sm:$0xff] %v3592_v35  ;;  %v3597_v28 = vpop.eup %2440 }
 0x785   :  { %1766 = vperm.xlu0 %2385, %v3543_v18   ;;  %4141 = vst [vmem:[#allocation21_spill] sm:$0xff] %v3597_v28  ;;  %v3602_v14 = vpop.eup %2442 }
 0x786   :  { %1706 = vperm.xlu1 %2384, %v3547_v21   ;;  %4143 = vst [vmem:[#allocation14_spill] sm:$0xff] %v3602_v14  ;;  %v3607_v9 = vpop.eup %2444 }
 0x787   :  { %4145 = vst [vmem:[#allocation23_spill] sm:$0xff] %v3607_v9  ;;  %v3610_v30 = vpop.eup %2446 }
 0x788   :  { %4146 = vst [vmem:[#allocation7_spill] sm:$0xff] %v3610_v30  ;;  %v3613_v49 = vpop.eup %2448 }
 0x789   :  { %1772 = vperm.xlu0 %2385, %v3551_v39   ;;  %4147 = vst [vmem:[#allocation8_spill] sm:$0xff] %v3613_v49  ;;  %v3616_v7 = vpop.eup %2450 }
 0x78a   :  { %1709 = vperm.xlu1 %2384, %v3555_v2   ;;  %4148 = vst [vmem:[#allocation16_spill] sm:$0xff] %v3616_v7  ;;  %v3619_v4 = vpop.eup %2452 }
 0x78b   :  { %4149 = vst [vmem:[#allocation25_spill] sm:$0xff] %v3619_v4  ;;  %v3622_v15 = vpop.eup %2454 }
 0x78c   :  { %4150 = vst [vmem:[#allocation18_spill] sm:$0xff] %v3622_v15 }
 0x78d   :  { %1730 = vperm.xlu0 %2385, %v3559_v44  }
 0x78e   :  { %1715 = vperm.xlu1 %2384, %v3563_v1  }
 0x791   :  { %1733 = vperm.xlu0 %2385, %v3567_v37  }
 0x792   :  { %1718 = vperm.xlu1 %2384, %v3571_v13  }
 0x796   :  { %1721 = vperm.xlu1 %2384, %v3577_v34  }
 0x79a   :  { %1724 = vperm.xlu1 %2384, %v3582_v10  }
 0x79e   :  { %1727 = vperm.xlu1 %2384, %v3587_v0  }
 0x7a2   :  { %1739 = vperm.xlu1 %2384, %v3592_v35  }
 0x7a6   :  { %1745 = vperm.xlu1 %2384, %v3597_v28  }
 0x7aa   :  { %1751 = vperm.xlu1 %2384, %v3602_v14  }
 0x7ae   :  { %1757 = vperm.xlu1 %2384, %v3607_v9  }
 0x7b2   :  { %1763 = vperm.xlu1 %2384, %v3610_v30  }
 0x7b6   :  { %1769 = vperm.xlu1 %2384, %v3613_v49  }
 0x7ba   :  { %1775 = vperm.xlu1 %2384, %v3616_v7  }
 0x7be   :  { %1778 = vperm.xlu1 %2384, %v3619_v4  }
 0x7c2   :  { %1781 = vperm.xlu1 %2384, %v3622_v15  }
 0x7e8   :  { %v1713_v36 = vpop.permute.xlu0 %1712 }
 0x7e9   :  { %v1689_v29 = vpop.permute.xlu1 %1688 }
 0x7ea   :  { %v1786_v48 = vrot.slane %v1689_v29, %v2752_v47 }
 0x7ec   :  { %v1737_v32 = vpop.permute.xlu0 %1736 }
 0x7ed   :  { %v1692_v25 = vpop.permute.xlu1 %1691  ;;  %v1865_v35 = vrot.slane %v1737_v32, %v2752_v47 }
 0x7ee   :  { %v1790_v3 = vrot.slane %v1692_v25, %v4151_v17 }
 0x7f0   :  { %v1791_v50 = vsel %vm244_vm2, %v1790_v3, %v1786_v48  ;;  %v1743_v49 = vpop.permute.xlu0 %1742 }
 0x7f1   :  { %v1695_v57 = vpop.permute.xlu1 %1694  ;;  %v1874_v34 = vrot.slane %v1743_v49, %v2760_v51 }
 0x7f2   :  { %v1795_v13 = vrot.slane %v1695_v57, %v2760_v51 }
 0x7f4   :  { %v1749_v9 = vpop.permute.xlu0 %1748  ;;  %v1796_v49 = vsel %vm251_vm3, %v1795_v13, %v1791_v50 }
 0x7f5   :  { %v1698_v11 = vpop.permute.xlu1 %1697  ;;  %v1884_v47 = vrot.slane %v1749_v9, %v2770_v55 }
 0x7f6   :  { %v1800_v2 = vrot.slane %v1698_v11, %v2763_v52 }
 0x7f8   :  { %v1755_v29 = vpop.permute.xlu0 %1754 }
 0x7f9   :  { %v1701_v62 = vpop.permute.xlu1 %1700 }
 0x7fc   :  { %v1761_v3 = vpop.permute.xlu0 %1760 }
 0x7fd   :  { %v1704_v19 = vpop.permute.xlu1 %1703 }
 0x7fe   :  { %v1810_v32 = vrot.slane %v1704_v19, %v2773_v56 }
 0x800   :  { %v1767_v4 = vpop.permute.xlu0 %1766 }
 0x801   :  { %v1707_v38 = vpop.permute.xlu1 %1706 }
 0x802   :  { %v1815_v51 = vrot.slane %v1707_v38, %v2778_v59 }
 0x805   :  { %v1710_v5 = vpop.permute.xlu1 %1709 }
 0x809   :  { %v1716_v58 = vpop.permute.xlu1 %1715 }
 0x80d   :  { %v1719_v7 = vpop.permute.xlu1 %1718 }
 0x80e   :  { %v1835_v38 = vrot.slane %v1719_v7, %v4054_v27  ;;  %v1914_v7 = vrot.slane %v1767_v4, %v4054_v27 }
 0x811   :  { %v1722_v15 = vpop.permute.xlu1 %1721 }
 0x815   :  { %v1725_v30 = vpop.permute.xlu1 %1724 }
 0x819   :  { %v1728_v14 = vpop.permute.xlu1 %1727 }
 0x81d   :  { %v1740_v28 = vpop.permute.xlu1 %1739 }
 0x81e   :  { %v1869_v48 = vrot.slane %v1740_v28, %v4151_v17 }
 0x820   :  { %v1870_v0 = vsel %vm244_vm2, %v1869_v48, %v1865_v35  ;;  %v1805_v35 = vrot.slane %v1701_v62, %v2770_v55  ;;  %v1830_v62 = vrot.slane %v1716_v58, %v4053_v26  ;;  %vm4152_vm2 = vcmask 589312  }
 0x821   :  { %v1746_v25 = vpop.permute.xlu1 %1745  ;;  %v1875_v1 = vsel %vm251_vm3, %v1874_v34, %v1870_v0  ;;  %v1801_v0 = vsel %vm258_vm4, %v1800_v2, %v1796_v49  ;;  %v1845_v48 = vrot.slane %v1725_v30, %v4056_v43  ;;  %vm4153_vm3 = vmmov %vm4152_vm2 }
 0x822   :  { %v1879_v10 = vrot.slane %v1746_v25, %v2763_v52  ;;  %v1820_v52 = vrot.slane %v1710_v5, %v2781_v60  ;;  %v1806_v55 = vsel %vm265_vm5, %v1805_v35, %v1801_v0  ;;  %v1840_v5 = vrot.slane %v1722_v15, %v4055_v46 }
 0x823   :  { %v1811_v13 = vsel %vm272_vm6, %v1810_v32, %v1806_v55 }
 0x824   :  { %v1880_v28 = vsel %vm258_vm4, %v1879_v10, %v1875_v1  ;;  %v1894_v10 = vrot.slane %v1755_v29, %v2778_v59  ;;  %v1816_v9 = vsel %vm279_vm7, %v1815_v51, %v1811_v13  ;;  %v1825_v59 = vrot.slane %v1713_v36, %v2784_v61 }
 0x825   :  { %v1752_v37 = vpop.permute.xlu1 %1751  ;;  %v1885_v57 = vsel %vm265_vm5, %v1884_v47, %v1880_v28  ;;  %v1821_v2 = vsel %vm286_vm8, %v1820_v52, %v1816_v9  ;;  %vm4154_vm4 = vcmask 654912  }
 0x826   :  { %v1889_v17 = vrot.slane %v1752_v37, %v2773_v56  ;;  %v1773_v56 = vpop.permute.xlu0 %1772  ;;  %v1826_v25 = vsel %vm4152_vm2, %v1825_v59, %v1821_v2  ;;  %vm4155_vm5 = vmmov %vm4154_vm4  ;;  %vm4165_vm2 = vcmask 1041409   ;;  %v4166_v59 = vld [vmem:[#allocation24_spill] sm:$0xff] }
 0x827   :  { %v1924_v51 = vrot.slane %v1773_v56, %v4056_v43 }
 0x828   :  { %v1890_v1 = vsel %vm272_vm6, %v1889_v17, %v1885_v57  ;;  %v1831_v17 = vsel %vm4154_vm4, %v1830_v62, %v1826_v25  ;;  %vm4156_vm6 = vcmask 720512  }
 0x829   :  { %v1758_v39 = vpop.permute.xlu1 %1757  ;;  %v1895_v50 = vsel %vm279_vm7, %v1894_v10, %v1890_v1  ;;  %v1836_v15 = vsel %vm4156_vm6, %v1835_v38, %v1831_v17  ;;  %vm4157_vm7 = vmmov %vm4109_vm10  ;;  %v4168_v38 = vld [vmem:[#allocation26_spill] sm:$0xff]  ;;  %v4174_v17 = vld [vmem:[#allocation27_spill] sm:$0xff] }
 0x82a   :  { %v1899_v37 = vrot.slane %v1758_v39, %v2781_v60  ;;  %v1904_v39 = vrot.slane %v1761_v3, %v2784_v61  ;;  %v1731_v29 = vpop.permute.xlu0 %1730  ;;  %v1841_v3 = vsel %vm4157_vm7, %v1840_v5, %v1836_v15  ;;  %vm4159_vm10 = vmmov %vm4111_vm12 }
 0x82b   :  { %v1846_v47 = vsel %vm321_vm13, %v1845_v48, %v1841_v3  ;;  %vm4160_vm11 = vmmov %vm4157_vm7  ;;  %v4177_v3 = vld [vmem:[#allocation14_spill] sm:$0xff] }
 0x82c   :  { %v1900_v19 = vsel %vm286_vm8, %v1899_v37, %v1895_v50  ;;  %vm4158_vm8 = vmmov %vm4156_vm6 }
 0x82d   :  { %v1764_v34 = vpop.permute.xlu1 %1763  ;;  %v1905_v28 = vsel %vm4153_vm3, %v1904_v39, %v1900_v19  ;;  %vm4161_vm12 = vmmov %vm4112_vm14 }
 0x82e   :  { %v1909_v60 = vrot.slane %v1764_v34, %v4053_v26  ;;  %v1850_v26 = vrot.slane %v1728_v14, %v2815_v12  ;;  %v1734_v27 = vpop.permute.xlu0 %1733  ;;  %vm4162_vm14 = vmmov %vm4159_vm10 }
 0x82f   :  { %v1860_v52 = vrot.slane %v1734_v27, %v2857_v42  ;;  %vm4163_vm0 = vmmov %vm4161_vm12 }
 0x830   :  { %v1910_v36 = vsel %vm4155_vm5, %v1909_v60, %v1905_v28  ;;  %v1851_v32 = vsel %vm4159_vm10, %v1850_v26, %v1846_v47  ;;  %v4173_v28 = vld [vmem:[#allocation9_spill] sm:$0xff] }
 0x831   :  { %v1770_v11 = vpop.permute.xlu1 %1769  ;;  %v1915_v30 = vsel %vm4158_vm8, %v1914_v7, %v1910_v36  ;;  %v4175_v36 = vld [vmem:[#allocation10_spill] sm:$0xff]  ;;  %v4176_v7 = vld [vmem:[#allocation21_spill] sm:$0xff] }
 0x832   :  { %v1919_v61 = vrot.slane %v1770_v11, %v4055_v46  ;;  %v1855_v46 = vrot.slane %v1731_v29, %v4057_v33  ;;  %v4170_v29 = vld [vmem:[#allocation28_spill] sm:$0xff] }
 0x834   :  { %v1920_v49 = vsel %vm4160_vm11, %v1919_v61, %v1915_v30  ;;  %v1856_v0 = vsel %vm4161_vm12, %v1855_v46, %v1851_v32  ;;  %v4178_v30 = vld [vmem:[#allocation23_spill] sm:$0xff]  ;;  %v4181_v46 = vld [vmem:[#allocation16_spill] sm:$0xff] }
 0x835   :  { %v1776_v58 = vpop.permute.xlu1 %1775  ;;  %v1925_v57 = vsel %vm321_vm13, %v1924_v51, %v1920_v49  ;;  %v1861_v43 = vsel %vm4114_vm1, %v1860_v52, %v1856_v0  ;;  %v4179_v32 = vld [vmem:[#allocation7_spill] sm:$0xff] }
 0x836   :  { %v1929_v14 = vrot.slane %v1776_v58, %v2815_v12 }
 0x838   :  { %v1930_v1 = vsel %vm4162_vm14, %v1929_v14, %v1925_v57  ;;  %v4180_v14 = vld [vmem:[#allocation8_spill] sm:$0xff] }
 0x839   :  { %v1779_v35 = vpop.permute.xlu1 %1778 }
 0x83a   :  { %v1934_v4 = vrot.slane %v1779_v35, %v4057_v33 }
 0x83c   :  { %v1935_v12 = vsel %vm4163_vm0, %v1934_v4, %v1930_v1  ;;  %v4182_v4 = vld [vmem:[#allocation18_spill] sm:$0xff] }
 0x83d   :  { %v1782_v34 = vpop.permute.xlu1 %1781 }
 0x83e   :  { %v1939_v37 = vrot.slane %v1782_v34, %v2857_v42 }
 0x840   :  { %v1940_v10 = vsel %vm4164_vm9, %v1939_v37, %v1935_v12 }
 0x841   :  { %v1941_v55 = vsel %vm4165_vm2, %v1940_v10, %v1861_v43 }
 0x842   :  { %v1943_v33 = vsel %vm525_vm15, %v1941_v55, 0.0 }
 0x843   :  { %1944 = vadd.xlane.f32.xlu0 %v1943_v33 }
 0x8cc   :  { %v1945_v56 = vpop.xlane.xlu0 %1944 }
 0x8cd   :  { %v1950_v13 = vrot.slane %v1945_v56, %v2986_v41  ;;  %v1954_v9 = vrot.slane %v1945_v56, %v2990_v24 }
 0x8cf   :  { %2456 = vrcp.f32 %v1950_v13 }
 0x8d0   :  { %2458 = vrcp.f32 %v1954_v9 }
 0x8dc   :  { %v2457_v50 = vpop.eup %2456 }
 0x8dd   :  { %v1966_v42 = vmul.f32 %v2457_v50, %v3487_v31  ;;  %v1958_v11 = vmul.f32 %v2457_v50, %v3491_v45  ;;  %v1972_v2 = vmul.f32 %v2457_v50, %v3559_v44  ;;  %v1959_v62 = vmul.f32 %v2457_v50, %v3501_v23  ;;  %v2459_v19 = vpop.eup %2458 }
 0x8de   :  { %v1975_v41 = vmul.f32 %v2459_v19, %v3497_v6  ;;  %v1960_v60 = vmul.f32 %v2457_v50, %v3511_v40  ;;  %v1977_v24 = vmul.f32 %v2459_v19, %v3507_v8  ;;  %v1961_v31 = vmul.f32 %v2457_v50, %v3521_v16 }
 0x8df   :  { %2065 = vperm.xlu0 %2385, %v1966_v42   ;;  %2025 = vperm.xlu1 %2384, %v1958_v11   ;;  %v1979_v45 = vmul.f32 %v2459_v19, %v3517_v22  ;;  %v1962_v44 = vmul.f32 %v2457_v50, %v3531_v54  ;;  %v1981_v23 = vmul.f32 %v2459_v19, %v3527_v53  ;;  %v4167_v54 = vld [vmem:[#allocation22_spill] sm:$0xff] }
 0x8e0   :  { %v1963_v6 = vmul.f32 %v2457_v50, %v3539_v20  ;;  %v1983_v40 = vmul.f32 %v2459_v19, %v3535_v63  ;;  %v1964_v8 = vmul.f32 %v2457_v50, %v3547_v21  ;;  %v1985_v16 = vmul.f32 %v2459_v19, %v3543_v18  ;;  %v4169_v20 = vld [vmem:[#allocation25_spill] sm:$0xff]  ;;  %v4172_v18 = vld [vmem:[#allocation6_spill] sm:$0xff] }
 0x8e1   :  { %v1965_v22 = vmul.f32 %v2457_v50, %v4166_v59  ;;  %v1987_v39 = vmul.f32 %v2459_v19, %v4167_v54  ;;  %v1967_v53 = vmul.f32 %v2457_v50, %v4168_v38  ;;  %v1989_v5 = vmul.f32 %v2459_v19, %v4169_v20  ;;  %v4171_v21 = vld [vmem:[#allocation13_spill] sm:$0xff] }
 0x8e2   :  { %v1968_v63 = vmul.f32 %v2457_v50, %v4170_v29  ;;  %v1969_v25 = vmul.f32 %v2457_v50, %v4171_v21  ;;  %v1970_v48 = vmul.f32 %v2457_v50, %v4172_v18  ;;  %v1971_v58 = vmul.f32 %v2457_v50, %v4173_v28 }
 0x8e3   :  { %2095 = vperm.xlu0 %2385, %v1972_v2   ;;  %2030 = vperm.xlu1 %2384, %v1959_v62   ;;  %v1973_v26 = vmul.f32 %v2457_v50, %v4174_v17  ;;  %v1976_v61 = vmul.f32 %v2459_v19, %v4175_v36  ;;  %v1978_v15 = vmul.f32 %v2459_v19, %v4176_v7 }
 0x8e4   :  { %v1980_v47 = vmul.f32 %v2459_v19, %v4177_v3  ;;  %v1982_v35 = vmul.f32 %v2459_v19, %v4178_v30  ;;  %v1984_v49 = vmul.f32 %v2459_v19, %v4179_v32  ;;  %v1986_v51 = vmul.f32 %v2459_v19, %v4180_v14 }
 0x8e5   :  { %v1988_v27 = vmul.f32 %v2459_v19, %v4181_v46  ;;  %v1990_v57 = vmul.f32 %v2459_v19, %v4182_v4 }
 0x8e7   :  { %2105 = vperm.xlu0 %2385, %v1975_v41   ;;  %2035 = vperm.xlu1 %2384, %v1960_v60  }
 0x8eb   :  { %2115 = vperm.xlu0 %2385, %v1977_v24   ;;  %2040 = vperm.xlu1 %2384, %v1961_v31  }
 0x8ef   :  { %2125 = vperm.xlu0 %2385, %v1979_v45   ;;  %2045 = vperm.xlu1 %2384, %v1962_v44  }
 0x8f3   :  { %2135 = vperm.xlu0 %2385, %v1981_v23   ;;  %2050 = vperm.xlu1 %2384, %v1963_v6  }
 0x8f7   :  { %2145 = vperm.xlu0 %2385, %v1983_v40   ;;  %2055 = vperm.xlu1 %2384, %v1964_v8  }
 0x8fb   :  { %2155 = vperm.xlu0 %2385, %v1985_v16   ;;  %2060 = vperm.xlu1 %2384, %v1965_v22  }
 0x8ff   :  { %2165 = vperm.xlu0 %2385, %v1987_v39   ;;  %2070 = vperm.xlu1 %2384, %v1967_v53  }
 0x903   :  { %2175 = vperm.xlu0 %2385, %v1989_v5   ;;  %2075 = vperm.xlu1 %2384, %v1968_v63  }
 0x907   :  { %2080 = vperm.xlu1 %2384, %v1969_v25  }
 0x90b   :  { %2085 = vperm.xlu1 %2384, %v1970_v48  }
 0x90f   :  { %2090 = vperm.xlu1 %2384, %v1971_v58  }
 0x913   :  { %2100 = vperm.xlu1 %2384, %v1973_v26  }
 0x917   :  { %2110 = vperm.xlu1 %2384, %v1976_v61  }
 0x91b   :  { %2120 = vperm.xlu1 %2384, %v1978_v15  }
 0x91f   :  { %2130 = vperm.xlu1 %2384, %v1980_v47  }
 0x923   :  { %2140 = vperm.xlu1 %2384, %v1982_v35  }
 0x927   :  { %2150 = vperm.xlu1 %2384, %v1984_v49  }
 0x92b   :  { %2160 = vperm.xlu1 %2384, %v1986_v51  }
 0x92f   :  { %2170 = vperm.xlu1 %2384, %v1988_v27  }
 0x933   :  { %2180 = vperm.xlu1 %2384, %v1990_v57  }
 0x934   :  { %2471 = shalt.err (!%p2468_p4)
}
 0x935   :  { %s2488_s10 = smov 16   ;;  %s2489_s11 = smov 1   ;;  %v1999_v34 = vld [vmem:[%s3950_s0 + $0x40] sm:$0xff]  ;;  %v2005_v43 = vld [vmem:[%s3950_s0 + $0x70] sm:$0xff]  ;;  %v1992_v10 = vld [vmem:[%s3950_s0 + $0x8] sm:$0xff]  ;;  %vm4183_vm13 = vcmask 130048  }
 0x936   :  { %2260 = dma.vmem_to_hbm [thread:$0]  %s2255_s8, 32, %s3954_s4, [#allocation3], %s2488_s10, %s2488_s10, %s2489_s11   ;;  %vm4184_vm15 = vmmov %vm4183_vm13 }
 0x937   :  { %v1991_v0 = vld [vmem:[%s3950_s0] sm:$0xff]  ;;  %v1993_v50 = vld [vmem:[%s3950_s0 + $0x10] sm:$0xff]  ;;  %vm4185_vm3 = vmmov %vm4183_vm13 }
 0x938   :  { %v2007_v9 = vld [vmem:[%s3950_s0 + $0x80] sm:$0xff]  ;;  %vm4186_vm4 = vmmov %vm4185_vm3  ;;  %v2009_v19 = vld [vmem:[%s3950_s0 + $0x90] sm:$0xff] }
 0x939   :  { %v1994_v41 = vld [vmem:[%s3950_s0 + $0x18] sm:$0xff]  ;;  %vm4187_vm5 = vmmov %vm4185_vm3  ;;  %v2011_v44 = vld [vmem:[%s3950_s0 + $0xa0] sm:$0xff] }
 0x93a   :  { %vm4188_vm6 = vmmov %vm4185_vm3  ;;  %v1995_v23 = vld [vmem:[%s3950_s0 + $0x20] sm:$0xff]  ;;  %v2013_v59 = vld [vmem:[%s3950_s0 + $0xb0] sm:$0xff] }
 0x93b   :  { %vm4189_vm7 = vmmov %vm4185_vm3  ;;  %v1996_v22 = vld [vmem:[%s3950_s0 + $0x28] sm:$0xff]  ;;  %v2015_v20 = vld [vmem:[%s3950_s0 + $0xc0] sm:$0xff] }
 0x93c   :  { %vm4190_vm8 = vmmov %vm4185_vm3  ;;  %v1997_v5 = vld [vmem:[%s3950_s0 + $0x30] sm:$0xff]  ;;  %v1998_v48 = vld [vmem:[%s3950_s0 + $0x38] sm:$0xff] }
 0x93d   :  { %vm4191_vm10 = vmmov %vm4185_vm3  ;;  %v2017_v18 = vld [vmem:[%s3950_s0 + $0xd0] sm:$0xff]  ;;  %v2019_v36 = vld [vmem:[%s3950_s0 + $0xe0] sm:$0xff] }
 0x93e   :  { %vm4192_vm11 = vmmov %vm4185_vm3  ;;  %v2000_v61 = vld [vmem:[%s3950_s0 + $0x48] sm:$0xff]  ;;  %v2021_v30 = vld [vmem:[%s3950_s0 + $0xf0] sm:$0xff] }
 0x93f   :  { %vm4193_vm12 = vmmov %vm4185_vm3  ;;  %v2001_v35 = vld [vmem:[%s3950_s0 + $0x50] sm:$0xff]  ;;  %v2002_v46 = vld [vmem:[%s3950_s0 + $0x58] sm:$0xff] }
 0x940   :  { %vm4194_vm14 = vmmov %vm4185_vm3  ;;  %v2003_v57 = vld [vmem:[%s3950_s0 + $0x60] sm:$0xff] }
 0x941   :  { %vm4195_vm0 = vmmov %vm4185_vm3 }
 0x942   :  { %vm4196_vm1 = vmmov %vm4195_vm0 }
 0x943   :  { %vm4197_vm9 = vmmov %vm4195_vm0 }
 0x944   :  { %vm4198_vm2 = vmmov %vm4195_vm0 }
 0x95a   :  { %v2066_v52 = vpop.permute.xlu0 %2065  ;;  %v2026_v1 = vpop.permute.xlu1 %2025 }
 0x95b   :  { %v2191_v37 = vmul.f32 %v2066_v52, %v1999_v34  ;;  %v2183_v12 = vmul.f32 %v2026_v1, %v1991_v0  ;;  %v2004_v52 = vld [vmem:[%s3950_s0 + $0x68] sm:$0xff] }
 0x95d   :  { %2223 = vst.msk [vmem:[%s3953_s3 + $0x40] sm:$0xff] %vm4183_vm13, %v2191_v37  ;;  %vm4199_vm13 = vmmov %vm4195_vm0 }
 0x95e   :  { %2215 = vst.msk [vmem:[%s3953_s3] sm:$0xff] %vm4184_vm15, %v2183_v12  ;;  %v2096_v55 = vpop.permute.xlu0 %2095  ;;  %v2031_v33 = vpop.permute.xlu1 %2030  ;;  %vm4200_vm15 = vmmov %vm4195_vm0  ;;  %v2006_v12 = vld [vmem:[%s3950_s0 + $0x78] sm:$0xff] }
 0x95f   :  { %v2197_v56 = vmul.f32 %v2096_v55, %v2005_v43  ;;  %v2184_v13 = vmul.f32 %v2031_v33, %v1992_v10  ;;  %v2008_v55 = vld [vmem:[%s3950_s0 + $0x88] sm:$0xff] }
 0x961   :  { %2229 = vst.msk [vmem:[%s3953_s3 + $0x70] sm:$0xff] %vm4185_vm3, %v2197_v56  ;;  %vm4201_vm3 = vmmov %vm4195_vm0 }
 0x962   :  { %2216 = vst.msk [vmem:[%s3953_s3 + $0x8] sm:$0xff] %vm4186_vm4, %v2184_v13  ;;  %v2106_v42 = vpop.permute.xlu0 %2105  ;;  %v2036_v11 = vpop.permute.xlu1 %2035  ;;  %vm4202_vm4 = vmmov %vm4195_vm0  ;;  %v2010_v13 = vld [vmem:[%s3950_s0 + $0x98] sm:$0xff] }
 0x963   :  { %v2199_v2 = vmul.f32 %v2106_v42, %v2007_v9  ;;  %v2185_v62 = vmul.f32 %v2036_v11, %v1993_v50  ;;  %v2012_v42 = vld [vmem:[%s3950_s0 + $0xa8] sm:$0xff] }
 0x965   :  { %2231 = vst.msk [vmem:[%s3953_s3 + $0x80] sm:$0xff] %vm4187_vm5, %v2199_v2  ;;  %vm4203_vm5 = vmmov %vm4195_vm0 }
 0x966   :  { %2217 = vst.msk [vmem:[%s3953_s3 + $0x10] sm:$0xff] %vm4188_vm6, %v2185_v62  ;;  %v2116_v60 = vpop.permute.xlu0 %2115  ;;  %v2041_v24 = vpop.permute.xlu1 %2040  ;;  %vm4204_vm6 = vmmov %vm4195_vm0  ;;  %v2014_v62 = vld [vmem:[%s3950_s0 + $0xb8] sm:$0xff] }
 0x967   :  { %v2201_v31 = vmul.f32 %v2116_v60, %v2009_v19  ;;  %v2186_v45 = vmul.f32 %v2041_v24, %v1994_v41  ;;  %v2016_v60 = vld [vmem:[%s3950_s0 + $0xc8] sm:$0xff] }
 0x969   :  { %2233 = vst.msk [vmem:[%s3953_s3 + $0x90] sm:$0xff] %vm4189_vm7, %v2201_v31  ;;  %vm4205_vm7 = vmmov %vm4195_vm0 }
 0x96a   :  { %2218 = vst.msk [vmem:[%s3953_s3 + $0x18] sm:$0xff] %vm4190_vm8, %v2186_v45  ;;  %v2126_v6 = vpop.permute.xlu0 %2125  ;;  %v2046_v40 = vpop.permute.xlu1 %2045  ;;  %vm4206_vm8 = vmmov %vm4195_vm0  ;;  %v2018_v45 = vld [vmem:[%s3950_s0 + $0xd8] sm:$0xff] }
 0x96b   :  { %v2203_v8 = vmul.f32 %v2126_v6, %v2011_v44  ;;  %v2187_v16 = vmul.f32 %v2046_v40, %v1995_v23  ;;  %v2020_v6 = vld [vmem:[%s3950_s0 + $0xe8] sm:$0xff] }
 0x96d   :  { %2235 = vst.msk [vmem:[%s3953_s3 + $0xa0] sm:$0xff] %vm4191_vm10, %v2203_v8  ;;  %vm4207_vm10 = vmmov %vm4195_vm0 }
 0x96e   :  { %2219 = vst.msk [vmem:[%s3953_s3 + $0x20] sm:$0xff] %vm4192_vm11, %v2187_v16  ;;  %v2136_v54 = vpop.permute.xlu0 %2135  ;;  %v2051_v39 = vpop.permute.xlu1 %2050  ;;  %vm4208_vm11 = vmmov %vm4195_vm0  ;;  %v2022_v16 = vld [vmem:[%s3950_s0 + $0xf8] sm:$0xff] }
 0x96f   :  { %v2205_v38 = vmul.f32 %v2136_v54, %v2013_v59  ;;  %v2188_v53 = vmul.f32 %v2051_v39, %v1996_v22 }
 0x971   :  { %2237 = vst.msk [vmem:[%s3953_s3 + $0xb0] sm:$0xff] %vm4193_vm12, %v2205_v38  ;;  %vm4209_vm12 = vmmov %vm4195_vm0 }
 0x972   :  { %2220 = vst.msk [vmem:[%s3953_s3 + $0x28] sm:$0xff] %vm4194_vm14, %v2188_v53  ;;  %v2146_v29 = vpop.permute.xlu0 %2145  ;;  %v2056_v63 = vpop.permute.xlu1 %2055  ;;  %vm4210_vm14 = vmmov %vm4195_vm0 }
 0x973   :  { %v2207_v21 = vmul.f32 %v2146_v29, %v2015_v20  ;;  %v2189_v25 = vmul.f32 %v2056_v63, %v1997_v5 }
 0x975   :  { %2239 = vst.msk [vmem:[%s3953_s3 + $0xc0] sm:$0xff] %vm4195_vm0, %v2207_v21 }
 0x976   :  { %2221 = vst.msk [vmem:[%s3953_s3 + $0x30] sm:$0xff] %vm4196_vm1, %v2189_v25  ;;  %v2156_v28 = vpop.permute.xlu0 %2155  ;;  %v2061_v58 = vpop.permute.xlu1 %2060  ;;  %vm4211_vm1 = vmmov %vm4195_vm0 }
 0x977   :  { %v2209_v17 = vmul.f32 %v2156_v28, %v2017_v18  ;;  %v2190_v26 = vmul.f32 %v2061_v58, %v1998_v48 }
 0x979   :  { %2241 = vst.msk [vmem:[%s3953_s3 + $0xd0] sm:$0xff] %vm4197_vm9, %v2209_v17  ;;  %vm4212_vm9 = vmmov %vm4195_vm0 }
 0x97a   :  { %2222 = vst.msk [vmem:[%s3953_s3 + $0x38] sm:$0xff] %vm4198_vm2, %v2190_v26  ;;  %v2166_v7 = vpop.permute.xlu0 %2165  ;;  %v2071_v15 = vpop.permute.xlu1 %2070  ;;  %vm4213_vm2 = vmmov %vm4195_vm0 }
 0x97b   :  { %v2211_v3 = vmul.f32 %v2166_v7, %v2019_v36  ;;  %v2192_v47 = vmul.f32 %v2071_v15, %v2000_v61 }
 0x97d   :  { %2243 = vst.msk [vmem:[%s3953_s3 + $0xe0] sm:$0xff] %vm4199_vm13, %v2211_v3 }
 0x97e   :  { %2224 = vst.msk [vmem:[%s3953_s3 + $0x48] sm:$0xff] %vm4200_vm15, %v2192_v47  ;;  %v2176_v32 = vpop.permute.xlu0 %2175  ;;  %v2076_v49 = vpop.permute.xlu1 %2075 }
 0x97f   :  { %v2213_v14 = vmul.f32 %v2176_v32, %v2021_v30  ;;  %v2193_v51 = vmul.f32 %v2076_v49, %v2001_v35 }
 0x981   :  { %2245 = vst.msk [vmem:[%s3953_s3 + $0xf0] sm:$0xff] %vm4201_vm3, %v2213_v14 }
 0x982   :  { %2225 = vst.msk [vmem:[%s3953_s3 + $0x50] sm:$0xff] %vm4202_vm4, %v2193_v51  ;;  %v2081_v27 = vpop.permute.xlu1 %2080 }
 0x983   :  { %v2194_v4 = vmul.f32 %v2081_v27, %v2002_v46 }
 0x985   :  { %2226 = vst.msk [vmem:[%s3953_s3 + $0x58] sm:$0xff] %vm4203_vm5, %v2194_v4 }
 0x986   :  { %v2086_v34 = vpop.permute.xlu1 %2085 }
 0x987   :  { %v2195_v0 = vmul.f32 %v2086_v34, %v2003_v57 }
 0x989   :  { %2227 = vst.msk [vmem:[%s3953_s3 + $0x60] sm:$0xff] %vm4204_vm6, %v2195_v0 }
 0x98a   :  { %v2091_v1 = vpop.permute.xlu1 %2090 }
 0x98b   :  { %v2196_v37 = vmul.f32 %v2091_v1, %v2004_v52 }
 0x98d   :  { %2228 = vst.msk [vmem:[%s3953_s3 + $0x68] sm:$0xff] %vm4205_vm7, %v2196_v37 }
 0x98e   :  { %v2101_v43 = vpop.permute.xlu1 %2100 }
 0x98f   :  { %v2198_v10 = vmul.f32 %v2101_v43, %v2006_v12 }
 0x991   :  { %2230 = vst.msk [vmem:[%s3953_s3 + $0x78] sm:$0xff] %vm4206_vm8, %v2198_v10 }
 0x992   :  { %v2111_v33 = vpop.permute.xlu1 %2110 }
 0x993   :  { %v2200_v56 = vmul.f32 %v2111_v33, %v2008_v55 }
 0x995   :  { %2232 = vst.msk [vmem:[%s3953_s3 + $0x88] sm:$0xff] %vm4207_vm10, %v2200_v56 }
 0x996   :  { %v2121_v9 = vpop.permute.xlu1 %2120 }
 0x997   :  { %v2202_v50 = vmul.f32 %v2121_v9, %v2010_v13 }
 0x999   :  { %2234 = vst.msk [vmem:[%s3953_s3 + $0x98] sm:$0xff] %vm4208_vm11, %v2202_v50 }
 0x99a   :  { %v2131_v11 = vpop.permute.xlu1 %2130 }
 0x99b   :  { %v2204_v2 = vmul.f32 %v2131_v11, %v2012_v42 }
 0x99d   :  { %2236 = vst.msk [vmem:[%s3953_s3 + $0xa8] sm:$0xff] %vm4209_vm12, %v2204_v2 }
 0x99e   :  { %v2141_v19 = vpop.permute.xlu1 %2140 }
 0x99f   :  { %v2206_v41 = vmul.f32 %v2141_v19, %v2014_v62 }
 0x9a1   :  { %2238 = vst.msk [vmem:[%s3953_s3 + $0xb8] sm:$0xff] %vm4210_vm14, %v2206_v41 }
 0x9a2   :  { %v2151_v24 = vpop.permute.xlu1 %2150 }
 0x9a3   :  { %v2208_v31 = vmul.f32 %v2151_v24, %v2016_v60 }
 0x9a5   :  { %2240 = vst.msk [vmem:[%s3953_s3 + $0xc8] sm:$0xff] %vm4195_vm0, %v2208_v31 }
 0x9a6   :  { %v2161_v44 = vpop.permute.xlu1 %2160 }
 0x9a7   :  { %v2210_v23 = vmul.f32 %v2161_v44, %v2018_v45 }
 0x9a9   :  { %2242 = vst.msk [vmem:[%s3953_s3 + $0xd8] sm:$0xff] %vm4211_vm1, %v2210_v23 }
 0x9aa   :  { %v2171_v40 = vpop.permute.xlu1 %2170 }
 0x9ab   :  { %v2212_v8 = vmul.f32 %v2171_v40, %v2020_v6 }
 0x9ad   :  { %2244 = vst.msk [vmem:[%s3953_s3 + $0xe8] sm:$0xff] %vm4212_vm9, %v2212_v8 }
 0x9ae   :  { %v2181_v59 = vpop.permute.xlu1 %2180 }
 0x9af   :  { %v2214_v22 = vmul.f32 %v2181_v59, %v2022_v16 }
 0x9b1   :  { %2246 = vst.msk [vmem:[%s3953_s3 + $0xf8] sm:$0xff] %vm4213_vm2, %v2214_v22 }
 0x9b2   :  { %2480 = dma.done.wait [#allocation3], 32  }
 0x9b3   :  { %2481 = vsyncadd [#allocation3], 4294967264 }
 0x9b4   :  { %2266 = vsyncpa [#allocation3], 1 }

</bundles_post_ra>
